<compile_context>
chip_gen: v5e
topology: v5e:2x2
jax: 0.10.0
libtpu: 0.0.40
codegen_flags: <defaults>
</compile_context>

<pallas_src>
import math

import jax
import jax.numpy as jnp
from jax import lax
from jax.experimental import pallas as pl
from jax.experimental.pallas import tpu as pltpu

# ---- small synthetic config ----
B = 2          # batch
S = 8          # sequence length
RGB_DIM = 256  # ninp (input carries RGB_DIM + 1 features; last one is dropped)
NHID = 128     # args.nhid  (transformer model dim / ffn dim)
NHEAD = 4      # args.nheads
NLAYERS = 2    # args.nlayers
PROJ = 128     # rgb_mlp output dim
DH = NHID // NHEAD


def _layer_norm(x, g, b, eps=1e-5):
    mu = jnp.mean(x, axis=-1, keepdims=True)
    xc = x - mu
    var = jnp.mean(xc * xc, axis=-1, keepdims=True)
    return xc * lax.rsqrt(var + eps) * g + b


# ---------------------------------------------------------------------------
# Fused forward kernel (one batch element per grid step)
# ---------------------------------------------------------------------------
def fused_forward_kernel(
        x_ref,                                   # (1, S, RGB_DIM + 1)
        w_in_ref, b_in_ref, pe_ref,              # input proj + pos encoding
        w_qkv_ref, b_qkv_ref,                    # (L, NHID, 3*NHID), (L, 1, 3*NHID)
        w_o_ref, b_o_ref,                        # (L, NHID, NHID),  (L, 1, NHID)
        ln1g_ref, ln1b_ref,
        w1_ref, b1_ref, w2_ref, b2_ref,          # FFN
        ln2g_ref, ln2b_ref,
        mlp_w1_ref, mlp_b1_ref, mlp_w2_ref, mlp_b2_ref,
        seq_ref, proj_ref):                      # outputs (1, S, NHID/PROJ)
    # Drop the trailing feature column inside the kernel (static lane slice,
    # avoids a separate XLA HBM->HBM copy before the kernel).
    x_full = x_ref[0]                            # (S, RGB_DIM + 1)
    x = x_full[:, :RGB_DIM]                      # (S, RGB_DIM)

    # Input projection + sqrt(d_model) scale + positional encoding.
    h = jnp.dot(x, w_in_ref[...], preferred_element_type=jnp.float32) + b_in_ref[...]
    # TODO(synk): sqrt(d_model) scale follows the standard tutorial
    # TransformerModel; actual TransformerModel source not provided.
    h = h * math.sqrt(float(NHID)) + pe_ref[...]

    scale = 1.0 / math.sqrt(float(DH))
    for l in range(NLAYERS):                     # static unrolled layer loop
        # Fused, full-lane QKV projection: (S,128) @ (128,384).
        qkv = (jnp.dot(h, w_qkv_ref[l], preferred_element_type=jnp.float32)
               + b_qkv_ref[l])
        q = qkv[:, 0 * NHID:1 * NHID]
        k = qkv[:, 1 * NHID:2 * NHID]
        v = qkv[:, 2 * NHID:3 * NHID]

        # Per-head attention on tiny (8,8)/(8,32) tiles, heads re-concatenated.
        ctx_heads = []
        for hh in range(NHEAD):                  # static unrolled head loop
            lo = hh * DH
            hi = lo + DH
            qh = q[:, lo:hi]
            kh = k[:, lo:hi]
            vh = v[:, lo:hi]
            s = lax.dot_general(qh, kh, (((1,), (1,)), ((), ())),
                                preferred_element_type=jnp.float32) * scale
            s = s - jnp.max(s, axis=-1, keepdims=True)
            p = jnp.exp(s)
            p = p * pl.reciprocal(jnp.sum(p, axis=-1, keepdims=True), approx=True)
            ctx_heads.append(jnp.dot(p, vh, preferred_element_type=jnp.float32))
        ctx = jnp.concatenate(ctx_heads, axis=-1)            # (S, NHID)

        # Single full-lane output projection.
        attn = (jnp.dot(ctx, w_o_ref[l], preferred_element_type=jnp.float32)
                + b_o_ref[l])

        # Post-LN residual blocks (PyTorch TransformerEncoderLayer default).
        x1 = _layer_norm(h + attn, ln1g_ref[l], ln1b_ref[l])
        hid = jnp.maximum(
            jnp.dot(x1, w1_ref[l], preferred_element_type=jnp.float32) + b1_ref[l],
            0.0)
        ffn = jnp.dot(hid, w2_ref[l], preferred_element_type=jnp.float32) + b2_ref[l]
        h = _layer_norm(x1 + ffn, ln2g_ref[l], ln2b_ref[l])

    # Full-S sequence output (wrapper slices off the last timestep).
    seq_ref[0] = h

    # rgb_mlp: Linear -> ReLU -> Linear, then L2 normalize (rsqrt, EUP path).
    m = jnp.maximum(
        jnp.dot(h, mlp_w1_ref[...], preferred_element_type=jnp.float32)
        + mlp_b1_ref[...], 0.0)
    y = (jnp.dot(m, mlp_w2_ref[...], preferred_element_type=jnp.float32)
         + mlp_b2_ref[...])
    ss = jnp.sum(y * y, axis=-1, keepdims=True)
    # F.normalize(p=2, eps=1e-12) == y * rsqrt(max(ss, eps^2))
    proj_ref[0] = y * lax.rsqrt(jnp.maximum(ss, 1e-24))


# ---------------------------------------------------------------------------
# pallas_call wrapper
# ---------------------------------------------------------------------------
def _const_spec(shape):
    n = len(shape)
    return pl.BlockSpec(shape, lambda i, _n=n: (0,) * _n)


def temporal_encoder_forward(rgb_input, params):
    b, s, f = rgb_input.shape                    # (B, S, RGB_DIM + 1)
    weights = (params["w_in"], params["b_in"], params["pe"],
               params["w_qkv"], params["b_qkv"],
               params["w_o"], params["b_o"],
               params["ln1g"], params["ln1b"],
               params["w1"], params["b1"], params["w2"], params["b2"],
               params["ln2g"], params["ln2b"],
               params["mlp_w1"], params["mlp_b1"],
               params["mlp_w2"], params["mlp_b2"])

    in_specs = [pl.BlockSpec((1, s, f), lambda i: (i, 0, 0))]
    in_specs += [_const_spec(w.shape) for w in weights]

    seq_full, proj_full = pl.pallas_call(
        fused_forward_kernel,
        out_shape=(jax.ShapeDtypeStruct((b, s, NHID), jnp.float32),
                   jax.ShapeDtypeStruct((b, s, PROJ), jnp.float32)),
        grid=(b,),
        in_specs=in_specs,
        out_specs=(pl.BlockSpec((1, s, NHID), lambda i: (i, 0, 0)),
                   pl.BlockSpec((1, s, PROJ), lambda i: (i, 0, 0))),
        compiler_params=pltpu.CompilerParams(
            dimension_semantics=("parallel",)),
    )(rgb_input, *weights)

    rgb_seq_out = seq_full[:, :-1, :]            # out[1][:-1] (drop last step)
    rgb_seq_proj = proj_full[:, :-1, :]
    return (None, None, rgb_seq_out, rgb_seq_proj)


# ---------------------------------------------------------------------------
# deterministic parameter construction (layer weights stacked on leading axis)
# ---------------------------------------------------------------------------
def init_params(key):
    def nrm(k, shape, scale=0.05):
        return scale * jax.random.normal(k, shape, jnp.float32)

    keys = jax.random.split(key, 7)

    # sinusoidal positional encoding (glue, plain JAX)
    pos = jnp.arange(S, dtype=jnp.float32)[:, None]
    div = jnp.exp(jnp.arange(0, NHID, 2, dtype=jnp.float32)
                  * (-jnp.log(10000.0) / NHID))
    pe = jnp.zeros((S, NHID), jnp.float32)
    pe = pe.at[:, 0::2].set(jnp.sin(pos * div))
    pe = pe.at[:, 1::2].set(jnp.cos(pos * div))

    params = {
        "w_in": nrm(keys[0], (RGB_DIM, NHID)),
        "b_in": jnp.zeros((1, NHID), jnp.float32),
        "pe": pe,
        "mlp_w1": nrm(keys[1], (NHID, PROJ)),
        "mlp_b1": jnp.zeros((1, PROJ), jnp.float32),
        "mlp_w2": nrm(keys[2], (PROJ, PROJ)),
        "mlp_b2": jnp.zeros((1, PROJ), jnp.float32),
        # encoder layers, stacked on a leading layer axis
        "w_qkv": nrm(keys[3], (NLAYERS, NHID, 3 * NHID)),
        "b_qkv": jnp.zeros((NLAYERS, 1, 3 * NHID), jnp.float32),
        "w_o": nrm(keys[4], (NLAYERS, NHID, NHID)),
        "b_o": jnp.zeros((NLAYERS, 1, NHID), jnp.float32),
        "ln1g": jnp.ones((NLAYERS, 1, NHID), jnp.float32),
        "ln1b": jnp.zeros((NLAYERS, 1, NHID), jnp.float32),
        "w1": nrm(keys[5], (NLAYERS, NHID, NHID)),
        "b1": jnp.zeros((NLAYERS, 1, NHID), jnp.float32),
        "w2": nrm(keys[6], (NLAYERS, NHID, NHID)),
        "b2": jnp.zeros((NLAYERS, 1, NHID), jnp.float32),
        "ln2g": jnp.ones((NLAYERS, 1, NHID), jnp.float32),
        "ln2b": jnp.zeros((NLAYERS, 1, NHID), jnp.float32),
    }
    return params


if __name__ == "__main__":
    key = jax.random.PRNGKey(0)
    k_inp, k_par = jax.random.split(key)
    rgb_input = jax.random.normal(k_inp, (B, S, RGB_DIM + 1), jnp.float32)
    params = init_params(k_par)

    fwd = jax.jit(temporal_encoder_forward)
    _, _, rgb_seq_out, rgb_seq_proj = fwd(rgb_input, params)
    jax.block_until_ready(rgb_seq_out)
    jax.block_until_ready(rgb_seq_proj)

    assert rgb_seq_out.shape == (B, S - 1, NHID)
    assert rgb_seq_proj.shape == (B, S - 1, PROJ)
    assert bool(jnp.all(jnp.isfinite(rgb_seq_out)))
    assert bool(jnp.all(jnp.isfinite(rgb_seq_proj)))
    print("KERNEL_OK")
</pallas_src>

<mosaic_0001>
module attributes {stable_mosaic.version = 11 : i64} {
  func.func @fused_forward_kernel(%arg0: i32, %arg1: memref<1x8x257xf32, #tpu.memory_space<vmem>>, %arg2: memref<256x128xf32, #tpu.memory_space<vmem>>, %arg3: memref<1x128xf32, #tpu.memory_space<vmem>>, %arg4: memref<8x128xf32, #tpu.memory_space<vmem>>, %arg5: memref<2x128x384xf32, #tpu.memory_space<vmem>>, %arg6: memref<2x1x384xf32, #tpu.memory_space<vmem>>, %arg7: memref<2x128x128xf32, #tpu.memory_space<vmem>>, %arg8: memref<2x1x128xf32, #tpu.memory_space<vmem>>, %arg9: memref<2x1x128xf32, #tpu.memory_space<vmem>>, %arg10: memref<2x1x128xf32, #tpu.memory_space<vmem>>, %arg11: memref<2x128x128xf32, #tpu.memory_space<vmem>>, %arg12: memref<2x1x128xf32, #tpu.memory_space<vmem>>, %arg13: memref<2x128x128xf32, #tpu.memory_space<vmem>>, %arg14: memref<2x1x128xf32, #tpu.memory_space<vmem>>, %arg15: memref<2x1x128xf32, #tpu.memory_space<vmem>>, %arg16: memref<2x1x128xf32, #tpu.memory_space<vmem>>, %arg17: memref<128x128xf32, #tpu.memory_space<vmem>>, %arg18: memref<1x128xf32, #tpu.memory_space<vmem>>, %arg19: memref<128x128xf32, #tpu.memory_space<vmem>>, %arg20: memref<1x128xf32, #tpu.memory_space<vmem>>, %arg21: memref<1x8x128xf32, #tpu.memory_space<vmem>>, %arg22: memref<1x8x128xf32, #tpu.memory_space<vmem>>) attributes {dimension_semantics = [#tpu.dimension_semantics<parallel>], iteration_bounds = array<i64: 2>, scalar_prefetch = 0 : i64, scratch_operands = 0 : i64, tpu.core_type = #tpu.core_type<tc>, window_params = [{transform_indices = @transform_0, window_bounds = array<i64: 1, 8, 257>}, {pipeline_mode = #tpu.pipeline_mode<synchronous>, transform_indices = @transform_1, window_bounds = array<i64: 256, 128>}, {pipeline_mode = #tpu.pipeline_mode<synchronous>, transform_indices = @transform_2, window_bounds = array<i64: 1, 128>}, {pipeline_mode = #tpu.pipeline_mode<synchronous>, transform_indices = @transform_3, window_bounds = array<i64: 8, 128>}, {pipeline_mode = #tpu.pipeline_mode<synchronous>, transform_indices = @transform_4, window_bounds = array<i64: 2, 128, 384>}, {pipeline_mode = #tpu.pipeline_mode<synchronous>, transform_indices = @transform_5, window_bounds = array<i64: 2, 1, 384>}, {pipeline_mode = #tpu.pipeline_mode<synchronous>, transform_indices = @transform_6, window_bounds = array<i64: 2, 128, 128>}, {pipeline_mode = #tpu.pipeline_mode<synchronous>, transform_indices = @transform_7, window_bounds = array<i64: 2, 1, 128>}, {pipeline_mode = #tpu.pipeline_mode<synchronous>, transform_indices = @transform_8, window_bounds = array<i64: 2, 1, 128>}, {pipeline_mode = #tpu.pipeline_mode<synchronous>, transform_indices = @transform_9, window_bounds = array<i64: 2, 1, 128>}, {pipeline_mode = #tpu.pipeline_mode<synchronous>, transform_indices = @transform_10, window_bounds = array<i64: 2, 128, 128>}, {pipeline_mode = #tpu.pipeline_mode<synchronous>, transform_indices = @transform_11, window_bounds = array<i64: 2, 1, 128>}, {pipeline_mode = #tpu.pipeline_mode<synchronous>, transform_indices = @transform_12, window_bounds = array<i64: 2, 128, 128>}, {pipeline_mode = #tpu.pipeline_mode<synchronous>, transform_indices = @transform_13, window_bounds = array<i64: 2, 1, 128>}, {pipeline_mode = #tpu.pipeline_mode<synchronous>, transform_indices = @transform_14, window_bounds = array<i64: 2, 1, 128>}, {pipeline_mode = #tpu.pipeline_mode<synchronous>, transform_indices = @transform_15, window_bounds = array<i64: 2, 1, 128>}, {pipeline_mode = #tpu.pipeline_mode<synchronous>, transform_indices = @transform_16, window_bounds = array<i64: 128, 128>}, {pipeline_mode = #tpu.pipeline_mode<synchronous>, transform_indices = @transform_17, window_bounds = array<i64: 1, 128>}, {pipeline_mode = #tpu.pipeline_mode<synchronous>, transform_indices = @transform_18, window_bounds = array<i64: 128, 128>}, {pipeline_mode = #tpu.pipeline_mode<synchronous>, transform_indices = @transform_19, window_bounds = array<i64: 1, 128>}, {transform_indices = @transform_20, window_bounds = array<i64: 1, 8, 128>}, {transform_indices = @transform_21, window_bounds = array<i64: 1, 8, 128>}]} {
    %c0 = arith.constant 0 : index
    %c0_0 = arith.constant 0 : index
    %c0_1 = arith.constant 0 : index
    %0 = vector.load %arg1[%c0, %c0_0, %c0_1] : memref<1x8x257xf32, #tpu.memory_space<vmem>>, vector<1x8x257xf32>
    %1 = vector.shape_cast %0 : vector<1x8x257xf32> to vector<8x257xf32>
    %2 = vector.extract_strided_slice %1 {offsets = [0, 0], sizes = [8, 256], strides = [1, 1]} : vector<8x257xf32> to vector<8x256xf32>
    %c0_2 = arith.constant 0 : index
    %c0_3 = arith.constant 0 : index
    %3 = vector.load %arg2[%c0_2, %c0_3] : memref<256x128xf32, #tpu.memory_space<vmem>>, vector<256x128xf32>
    %cst = arith.constant dense<0.000000e+00> : vector<8x128xf32>
    %4 = tpu.matmul %2, %3, %cst {dimension_numbers = #tpu.dot_dimension_numbers<[1], [0], [0], [1], [0, 0, 1, 1], [], []>} : vector<8x256xf32>, vector<256x128xf32>, vector<8x128xf32> -> vector<8x128xf32>
    %c0_4 = arith.constant 0 : index
    %c0_5 = arith.constant 0 : index
    %5 = vector.load %arg3[%c0_4, %c0_5] : memref<1x128xf32, #tpu.memory_space<vmem>>, vector<1x128xf32>
    %6 = vector.broadcast %5 : vector<1x128xf32> to vector<8x128xf32>
    %7 = arith.addf %4, %6 : vector<8x128xf32>
    %cst_6 = arith.constant 11.3137083 : f32
    %8 = vector.broadcast %cst_6 : f32 to vector<8x128xf32>
    %9 = arith.mulf %7, %8 : vector<8x128xf32>
    %c0_7 = arith.constant 0 : index
    %c0_8 = arith.constant 0 : index
    %10 = vector.load %arg4[%c0_7, %c0_8] : memref<8x128xf32, #tpu.memory_space<vmem>>, vector<8x128xf32>
    %11 = arith.addf %9, %10 : vector<8x128xf32>
    %c0_9 = arith.constant 0 : index
    %c0_10 = arith.constant 0 : index
    %c0_11 = arith.constant 0 : index
    %12 = vector.load %arg5[%c0_9, %c0_10, %c0_11] : memref<2x128x384xf32, #tpu.memory_space<vmem>>, vector<1x128x384xf32>
    %13 = vector.shape_cast %12 : vector<1x128x384xf32> to vector<128x384xf32>
    %cst_12 = arith.constant dense<0.000000e+00> : vector<8x384xf32>
    %14 = tpu.matmul %11, %13, %cst_12 {dimension_numbers = #tpu.dot_dimension_numbers<[1], [0], [0], [1], [0, 0, 1, 1], [], []>} : vector<8x128xf32>, vector<128x384xf32>, vector<8x384xf32> -> vector<8x384xf32>
    %c0_13 = arith.constant 0 : index
    %c0_14 = arith.constant 0 : index
    %c0_15 = arith.constant 0 : index
    %15 = vector.load %arg6[%c0_13, %c0_14, %c0_15] : memref<2x1x384xf32, #tpu.memory_space<vmem>>, vector<1x1x384xf32>
    %16 = vector.shape_cast %15 : vector<1x1x384xf32> to vector<1x384xf32>
    %17 = vector.broadcast %16 : vector<1x384xf32> to vector<8x384xf32>
    %18 = arith.addf %14, %17 : vector<8x384xf32>
    %19 = vector.extract_strided_slice %18 {offsets = [0, 0], sizes = [8, 128], strides = [1, 1]} : vector<8x384xf32> to vector<8x128xf32>
    %20 = vector.extract_strided_slice %18 {offsets = [0, 128], sizes = [8, 128], strides = [1, 1]} : vector<8x384xf32> to vector<8x128xf32>
    %21 = vector.extract_strided_slice %18 {offsets = [0, 256], sizes = [8, 128], strides = [1, 1]} : vector<8x384xf32> to vector<8x128xf32>
    %22 = vector.extract_strided_slice %19 {offsets = [0, 0], sizes = [8, 32], strides = [1, 1]} : vector<8x128xf32> to vector<8x32xf32>
    %23 = vector.extract_strided_slice %20 {offsets = [0, 0], sizes = [8, 32], strides = [1, 1]} : vector<8x128xf32> to vector<8x32xf32>
    %24 = vector.extract_strided_slice %21 {offsets = [0, 0], sizes = [8, 32], strides = [1, 1]} : vector<8x128xf32> to vector<8x32xf32>
    %cst_16 = arith.constant dense<0.000000e+00> : vector<8x8xf32>
    %25 = tpu.matmul %22, %23, %cst_16 {dimension_numbers = #tpu.dot_dimension_numbers<[1], [1], [0], [0], [0, 0, 1, 0], [], []>} : vector<8x32xf32>, vector<8x32xf32>, vector<8x8xf32> -> vector<8x8xf32>
    %cst_17 = arith.constant 0.176776692 : f32
    %26 = vector.broadcast %cst_17 : f32 to vector<8x8xf32>
    %27 = arith.mulf %25, %26 : vector<8x8xf32>
    %cst_18 = arith.constant dense<0xFF800000> : vector<8xf32>
    %28 = vector.multi_reduction <maximumf>, %27, %cst_18 [1] : vector<8x8xf32> to vector<8xf32>
    %29 = vector.shape_cast %28 : vector<8xf32> to vector<8x1xf32>
    %30 = vector.broadcast %29 : vector<8x1xf32> to vector<8x8xf32>
    %31 = arith.subf %27, %30 : vector<8x8xf32>
    %32 = math.exp %31 : vector<8x8xf32>
    %cst_19 = arith.constant dense<0.000000e+00> : vector<8xf32>
    %33 = vector.multi_reduction <add>, %32, %cst_19 [1] : vector<8x8xf32> to vector<8xf32>
    %34 = vector.shape_cast %33 : vector<8xf32> to vector<8x1xf32>
    %35 = tpu.reciprocal %34 {approx = true} : vector<8x1xf32> -> vector<8x1xf32>
    %36 = vector.broadcast %35 : vector<8x1xf32> to vector<8x8xf32>
    %37 = arith.mulf %32, %36 : vector<8x8xf32>
    %cst_20 = arith.constant dense<0.000000e+00> : vector<8x32xf32>
    %38 = tpu.matmul %37, %24, %cst_20 {dimension_numbers = #tpu.dot_dimension_numbers<[1], [0], [0], [1], [0, 0, 1, 1], [], []>} : vector<8x8xf32>, vector<8x32xf32>, vector<8x32xf32> -> vector<8x32xf32>
    %39 = vector.extract_strided_slice %19 {offsets = [0, 32], sizes = [8, 32], strides = [1, 1]} : vector<8x128xf32> to vector<8x32xf32>
    %40 = vector.extract_strided_slice %20 {offsets = [0, 32], sizes = [8, 32], strides = [1, 1]} : vector<8x128xf32> to vector<8x32xf32>
    %41 = vector.extract_strided_slice %21 {offsets = [0, 32], sizes = [8, 32], strides = [1, 1]} : vector<8x128xf32> to vector<8x32xf32>
    %cst_21 = arith.constant dense<0.000000e+00> : vector<8x8xf32>
    %42 = tpu.matmul %39, %40, %cst_21 {dimension_numbers = #tpu.dot_dimension_numbers<[1], [1], [0], [0], [0, 0, 1, 0], [], []>} : vector<8x32xf32>, vector<8x32xf32>, vector<8x8xf32> -> vector<8x8xf32>
    %cst_22 = arith.constant 0.176776692 : f32
    %43 = vector.broadcast %cst_22 : f32 to vector<8x8xf32>
    %44 = arith.mulf %42, %43 : vector<8x8xf32>
    %cst_23 = arith.constant dense<0xFF800000> : vector<8xf32>
    %45 = vector.multi_reduction <maximumf>, %44, %cst_23 [1] : vector<8x8xf32> to vector<8xf32>
    %46 = vector.shape_cast %45 : vector<8xf32> to vector<8x1xf32>
    %47 = vector.broadcast %46 : vector<8x1xf32> to vector<8x8xf32>
    %48 = arith.subf %44, %47 : vector<8x8xf32>
    %49 = math.exp %48 : vector<8x8xf32>
    %cst_24 = arith.constant dense<0.000000e+00> : vector<8xf32>
    %50 = vector.multi_reduction <add>, %49, %cst_24 [1] : vector<8x8xf32> to vector<8xf32>
    %51 = vector.shape_cast %50 : vector<8xf32> to vector<8x1xf32>
    %52 = tpu.reciprocal %51 {approx = true} : vector<8x1xf32> -> vector<8x1xf32>
    %53 = vector.broadcast %52 : vector<8x1xf32> to vector<8x8xf32>
    %54 = arith.mulf %49, %53 : vector<8x8xf32>
    %cst_25 = arith.constant dense<0.000000e+00> : vector<8x32xf32>
    %55 = tpu.matmul %54, %41, %cst_25 {dimension_numbers = #tpu.dot_dimension_numbers<[1], [0], [0], [1], [0, 0, 1, 1], [], []>} : vector<8x8xf32>, vector<8x32xf32>, vector<8x32xf32> -> vector<8x32xf32>
    %56 = vector.extract_strided_slice %19 {offsets = [0, 64], sizes = [8, 32], strides = [1, 1]} : vector<8x128xf32> to vector<8x32xf32>
    %57 = vector.extract_strided_slice %20 {offsets = [0, 64], sizes = [8, 32], strides = [1, 1]} : vector<8x128xf32> to vector<8x32xf32>
    %58 = vector.extract_strided_slice %21 {offsets = [0, 64], sizes = [8, 32], strides = [1, 1]} : vector<8x128xf32> to vector<8x32xf32>
    %cst_26 = arith.constant dense<0.000000e+00> : vector<8x8xf32>
    %59 = tpu.matmul %56, %57, %cst_26 {dimension_numbers = #tpu.dot_dimension_numbers<[1], [1], [0], [0], [0, 0, 1, 0], [], []>} : vector<8x32xf32>, vector<8x32xf32>, vector<8x8xf32> -> vector<8x8xf32>
    %cst_27 = arith.constant 0.176776692 : f32
    %60 = vector.broadcast %cst_27 : f32 to vector<8x8xf32>
    %61 = arith.mulf %59, %60 : vector<8x8xf32>
    %cst_28 = arith.constant dense<0xFF800000> : vector<8xf32>
    %62 = vector.multi_reduction <maximumf>, %61, %cst_28 [1] : vector<8x8xf32> to vector<8xf32>
    %63 = vector.shape_cast %62 : vector<8xf32> to vector<8x1xf32>
    %64 = vector.broadcast %63 : vector<8x1xf32> to vector<8x8xf32>
    %65 = arith.subf %61, %64 : vector<8x8xf32>
    %66 = math.exp %65 : vector<8x8xf32>
    %cst_29 = arith.constant dense<0.000000e+00> : vector<8xf32>
    %67 = vector.multi_reduction <add>, %66, %cst_29 [1] : vector<8x8xf32> to vector<8xf32>
    %68 = vector.shape_cast %67 : vector<8xf32> to vector<8x1xf32>
    %69 = tpu.reciprocal %68 {approx = true} : vector<8x1xf32> -> vector<8x1xf32>
    %70 = vector.broadcast %69 : vector<8x1xf32> to vector<8x8xf32>
    %71 = arith.mulf %66, %70 : vector<8x8xf32>
    %cst_30 = arith.constant dense<0.000000e+00> : vector<8x32xf32>
    %72 = tpu.matmul %71, %58, %cst_30 {dimension_numbers = #tpu.dot_dimension_numbers<[1], [0], [0], [1], [0, 0, 1, 1], [], []>} : vector<8x8xf32>, vector<8x32xf32>, vector<8x32xf32> -> vector<8x32xf32>
    %73 = vector.extract_strided_slice %19 {offsets = [0, 96], sizes = [8, 32], strides = [1, 1]} : vector<8x128xf32> to vector<8x32xf32>
    %74 = vector.extract_strided_slice %20 {offsets = [0, 96], sizes = [8, 32], strides = [1, 1]} : vector<8x128xf32> to vector<8x32xf32>
    %75 = vector.extract_strided_slice %21 {offsets = [0, 96], sizes = [8, 32], strides = [1, 1]} : vector<8x128xf32> to vector<8x32xf32>
    %cst_31 = arith.constant dense<0.000000e+00> : vector<8x8xf32>
    %76 = tpu.matmul %73, %74, %cst_31 {dimension_numbers = #tpu.dot_dimension_numbers<[1], [1], [0], [0], [0, 0, 1, 0], [], []>} : vector<8x32xf32>, vector<8x32xf32>, vector<8x8xf32> -> vector<8x8xf32>
    %cst_32 = arith.constant 0.176776692 : f32
    %77 = vector.broadcast %cst_32 : f32 to vector<8x8xf32>
    %78 = arith.mulf %76, %77 : vector<8x8xf32>
    %cst_33 = arith.constant dense<0xFF800000> : vector<8xf32>
    %79 = vector.multi_reduction <maximumf>, %78, %cst_33 [1] : vector<8x8xf32> to vector<8xf32>
    %80 = vector.shape_cast %79 : vector<8xf32> to vector<8x1xf32>
    %81 = vector.broadcast %80 : vector<8x1xf32> to vector<8x8xf32>
    %82 = arith.subf %78, %81 : vector<8x8xf32>
    %83 = math.exp %82 : vector<8x8xf32>
    %cst_34 = arith.constant dense<0.000000e+00> : vector<8xf32>
    %84 = vector.multi_reduction <add>, %83, %cst_34 [1] : vector<8x8xf32> to vector<8xf32>
    %85 = vector.shape_cast %84 : vector<8xf32> to vector<8x1xf32>
    %86 = tpu.reciprocal %85 {approx = true} : vector<8x1xf32> -> vector<8x1xf32>
    %87 = vector.broadcast %86 : vector<8x1xf32> to vector<8x8xf32>
    %88 = arith.mulf %83, %87 : vector<8x8xf32>
    %cst_35 = arith.constant dense<0.000000e+00> : vector<8x32xf32>
    %89 = tpu.matmul %88, %75, %cst_35 {dimension_numbers = #tpu.dot_dimension_numbers<[1], [0], [0], [1], [0, 0, 1, 1], [], []>} : vector<8x8xf32>, vector<8x32xf32>, vector<8x32xf32> -> vector<8x32xf32>
    %90 = tpu.concatenate %38, %55, %72, %89 in 1 : vector<8x32xf32>, vector<8x32xf32>, vector<8x32xf32>, vector<8x32xf32> -> vector<8x128xf32>
    %c0_36 = arith.constant 0 : index
    %c0_37 = arith.constant 0 : index
    %c0_38 = arith.constant 0 : index
    %91 = vector.load %arg7[%c0_36, %c0_37, %c0_38] : memref<2x128x128xf32, #tpu.memory_space<vmem>>, vector<1x128x128xf32>
    %92 = vector.shape_cast %91 : vector<1x128x128xf32> to vector<128x128xf32>
    %cst_39 = arith.constant dense<0.000000e+00> : vector<8x128xf32>
    %93 = tpu.matmul %90, %92, %cst_39 {dimension_numbers = #tpu.dot_dimension_numbers<[1], [0], [0], [1], [0, 0, 1, 1], [], []>} : vector<8x128xf32>, vector<128x128xf32>, vector<8x128xf32> -> vector<8x128xf32>
    %c0_40 = arith.constant 0 : index
    %c0_41 = arith.constant 0 : index
    %c0_42 = arith.constant 0 : index
    %94 = vector.load %arg8[%c0_40, %c0_41, %c0_42] : memref<2x1x128xf32, #tpu.memory_space<vmem>>, vector<1x1x128xf32>
    %95 = vector.shape_cast %94 : vector<1x1x128xf32> to vector<1x128xf32>
    %96 = vector.broadcast %95 : vector<1x128xf32> to vector<8x128xf32>
    %97 = arith.addf %93, %96 : vector<8x128xf32>
    %98 = arith.addf %11, %97 : vector<8x128xf32>
    %c0_43 = arith.constant 0 : index
    %c0_44 = arith.constant 0 : index
    %c0_45 = arith.constant 0 : index
    %99 = vector.load %arg9[%c0_43, %c0_44, %c0_45] : memref<2x1x128xf32, #tpu.memory_space<vmem>>, vector<1x1x128xf32>
    %100 = vector.shape_cast %99 : vector<1x1x128xf32> to vector<1x128xf32>
    %c0_46 = arith.constant 0 : index
    %c0_47 = arith.constant 0 : index
    %c0_48 = arith.constant 0 : index
    %101 = vector.load %arg10[%c0_46, %c0_47, %c0_48] : memref<2x1x128xf32, #tpu.memory_space<vmem>>, vector<1x1x128xf32>
    %102 = vector.shape_cast %101 : vector<1x1x128xf32> to vector<1x128xf32>
    %cst_49 = arith.constant dense<0.000000e+00> : vector<8xf32>
    %103 = vector.multi_reduction <add>, %98, %cst_49 [1] : vector<8x128xf32> to vector<8xf32>
    %104 = vector.shape_cast %103 : vector<8xf32> to vector<8x1xf32>
    %cst_50 = arith.constant 1.280000e+02 : f32
    %105 = vector.broadcast %cst_50 : f32 to vector<8x1xf32>
    %106 = arith.divf %104, %105 : vector<8x1xf32>
    %107 = vector.broadcast %106 : vector<8x1xf32> to vector<8x128xf32>
    %108 = arith.subf %98, %107 : vector<8x128xf32>
    %109 = arith.mulf %108, %108 : vector<8x128xf32>
    %cst_51 = arith.constant dense<0.000000e+00> : vector<8xf32>
    %110 = vector.multi_reduction <add>, %109, %cst_51 [1] : vector<8x128xf32> to vector<8xf32>
    %111 = vector.shape_cast %110 : vector<8xf32> to vector<8x1xf32>
    %cst_52 = arith.constant 1.280000e+02 : f32
    %112 = vector.broadcast %cst_52 : f32 to vector<8x1xf32>
    %113 = arith.divf %111, %112 : vector<8x1xf32>
    %cst_53 = arith.constant 9.99999974E-6 : f32
    %114 = vector.broadcast %cst_53 : f32 to vector<8x1xf32>
    %115 = arith.addf %113, %114 : vector<8x1xf32>
    %116 = math.rsqrt %115 : vector<8x1xf32>
    %117 = vector.broadcast %116 : vector<8x1xf32> to vector<8x128xf32>
    %118 = arith.mulf %108, %117 : vector<8x128xf32>
    %119 = vector.broadcast %100 : vector<1x128xf32> to vector<8x128xf32>
    %120 = arith.mulf %118, %119 : vector<8x128xf32>
    %121 = vector.broadcast %102 : vector<1x128xf32> to vector<8x128xf32>
    %122 = arith.addf %120, %121 : vector<8x128xf32>
    %c0_54 = arith.constant 0 : index
    %c0_55 = arith.constant 0 : index
    %c0_56 = arith.constant 0 : index
    %123 = vector.load %arg11[%c0_54, %c0_55, %c0_56] : memref<2x128x128xf32, #tpu.memory_space<vmem>>, vector<1x128x128xf32>
    %124 = vector.shape_cast %123 : vector<1x128x128xf32> to vector<128x128xf32>
    %cst_57 = arith.constant dense<0.000000e+00> : vector<8x128xf32>
    %125 = tpu.matmul %122, %124, %cst_57 {dimension_numbers = #tpu.dot_dimension_numbers<[1], [0], [0], [1], [0, 0, 1, 1], [], []>} : vector<8x128xf32>, vector<128x128xf32>, vector<8x128xf32> -> vector<8x128xf32>
    %c0_58 = arith.constant 0 : index
    %c0_59 = arith.constant 0 : index
    %c0_60 = arith.constant 0 : index
    %126 = vector.load %arg12[%c0_58, %c0_59, %c0_60] : memref<2x1x128xf32, #tpu.memory_space<vmem>>, vector<1x1x128xf32>
    %127 = vector.shape_cast %126 : vector<1x1x128xf32> to vector<1x128xf32>
    %128 = vector.broadcast %127 : vector<1x128xf32> to vector<8x128xf32>
    %129 = arith.addf %125, %128 : vector<8x128xf32>
    %cst_61 = arith.constant 0.000000e+00 : f32
    %130 = vector.broadcast %cst_61 : f32 to vector<8x128xf32>
    %131 = arith.maximumf %129, %130 : vector<8x128xf32>
    %c0_62 = arith.constant 0 : index
    %c0_63 = arith.constant 0 : index
    %c0_64 = arith.constant 0 : index
    %132 = vector.load %arg13[%c0_62, %c0_63, %c0_64] : memref<2x128x128xf32, #tpu.memory_space<vmem>>, vector<1x128x128xf32>
    %133 = vector.shape_cast %132 : vector<1x128x128xf32> to vector<128x128xf32>
    %cst_65 = arith.constant dense<0.000000e+00> : vector<8x128xf32>
    %134 = tpu.matmul %131, %133, %cst_65 {dimension_numbers = #tpu.dot_dimension_numbers<[1], [0], [0], [1], [0, 0, 1, 1], [], []>} : vector<8x128xf32>, vector<128x128xf32>, vector<8x128xf32> -> vector<8x128xf32>
    %c0_66 = arith.constant 0 : index
    %c0_67 = arith.constant 0 : index
    %c0_68 = arith.constant 0 : index
    %135 = vector.load %arg14[%c0_66, %c0_67, %c0_68] : memref<2x1x128xf32, #tpu.memory_space<vmem>>, vector<1x1x128xf32>
    %136 = vector.shape_cast %135 : vector<1x1x128xf32> to vector<1x128xf32>
    %137 = vector.broadcast %136 : vector<1x128xf32> to vector<8x128xf32>
    %138 = arith.addf %134, %137 : vector<8x128xf32>
    %139 = arith.addf %122, %138 : vector<8x128xf32>
    %c0_69 = arith.constant 0 : index
    %c0_70 = arith.constant 0 : index
    %c0_71 = arith.constant 0 : index
    %140 = vector.load %arg15[%c0_69, %c0_70, %c0_71] : memref<2x1x128xf32, #tpu.memory_space<vmem>>, vector<1x1x128xf32>
    %141 = vector.shape_cast %140 : vector<1x1x128xf32> to vector<1x128xf32>
    %c0_72 = arith.constant 0 : index
    %c0_73 = arith.constant 0 : index
    %c0_74 = arith.constant 0 : index
    %142 = vector.load %arg16[%c0_72, %c0_73, %c0_74] : memref<2x1x128xf32, #tpu.memory_space<vmem>>, vector<1x1x128xf32>
    %143 = vector.shape_cast %142 : vector<1x1x128xf32> to vector<1x128xf32>
    %cst_75 = arith.constant dense<0.000000e+00> : vector<8xf32>
    %144 = vector.multi_reduction <add>, %139, %cst_75 [1] : vector<8x128xf32> to vector<8xf32>
    %145 = vector.shape_cast %144 : vector<8xf32> to vector<8x1xf32>
    %cst_76 = arith.constant 1.280000e+02 : f32
    %146 = vector.broadcast %cst_76 : f32 to vector<8x1xf32>
    %147 = arith.divf %145, %146 : vector<8x1xf32>
    %148 = vector.broadcast %147 : vector<8x1xf32> to vector<8x128xf32>
    %149 = arith.subf %139, %148 : vector<8x128xf32>
    %150 = arith.mulf %149, %149 : vector<8x128xf32>
    %cst_77 = arith.constant dense<0.000000e+00> : vector<8xf32>
    %151 = vector.multi_reduction <add>, %150, %cst_77 [1] : vector<8x128xf32> to vector<8xf32>
    %152 = vector.shape_cast %151 : vector<8xf32> to vector<8x1xf32>
    %cst_78 = arith.constant 1.280000e+02 : f32
    %153 = vector.broadcast %cst_78 : f32 to vector<8x1xf32>
    %154 = arith.divf %152, %153 : vector<8x1xf32>
    %cst_79 = arith.constant 9.99999974E-6 : f32
    %155 = vector.broadcast %cst_79 : f32 to vector<8x1xf32>
    %156 = arith.addf %154, %155 : vector<8x1xf32>
    %157 = math.rsqrt %156 : vector<8x1xf32>
    %158 = vector.broadcast %157 : vector<8x1xf32> to vector<8x128xf32>
    %159 = arith.mulf %149, %158 : vector<8x128xf32>
    %160 = vector.broadcast %141 : vector<1x128xf32> to vector<8x128xf32>
    %161 = arith.mulf %159, %160 : vector<8x128xf32>
    %162 = vector.broadcast %143 : vector<1x128xf32> to vector<8x128xf32>
    %163 = arith.addf %161, %162 : vector<8x128xf32>
    %c1 = arith.constant 1 : index
    %c0_80 = arith.constant 0 : index
    %c0_81 = arith.constant 0 : index
    %164 = vector.load %arg5[%c1, %c0_80, %c0_81] : memref<2x128x384xf32, #tpu.memory_space<vmem>>, vector<1x128x384xf32>
    %165 = vector.shape_cast %164 : vector<1x128x384xf32> to vector<128x384xf32>
    %cst_82 = arith.constant dense<0.000000e+00> : vector<8x384xf32>
    %166 = tpu.matmul %163, %165, %cst_82 {dimension_numbers = #tpu.dot_dimension_numbers<[1], [0], [0], [1], [0, 0, 1, 1], [], []>} : vector<8x128xf32>, vector<128x384xf32>, vector<8x384xf32> -> vector<8x384xf32>
    %c1_83 = arith.constant 1 : index
    %c0_84 = arith.constant 0 : index
    %c0_85 = arith.constant 0 : index
    %167 = vector.load %arg6[%c1_83, %c0_84, %c0_85] : memref<2x1x384xf32, #tpu.memory_space<vmem>>, vector<1x1x384xf32>
    %168 = vector.shape_cast %167 : vector<1x1x384xf32> to vector<1x384xf32>
    %169 = vector.broadcast %168 : vector<1x384xf32> to vector<8x384xf32>
    %170 = arith.addf %166, %169 : vector<8x384xf32>
    %171 = vector.extract_strided_slice %170 {offsets = [0, 0], sizes = [8, 128], strides = [1, 1]} : vector<8x384xf32> to vector<8x128xf32>
    %172 = vector.extract_strided_slice %170 {offsets = [0, 128], sizes = [8, 128], strides = [1, 1]} : vector<8x384xf32> to vector<8x128xf32>
    %173 = vector.extract_strided_slice %170 {offsets = [0, 256], sizes = [8, 128], strides = [1, 1]} : vector<8x384xf32> to vector<8x128xf32>
    %174 = vector.extract_strided_slice %171 {offsets = [0, 0], sizes = [8, 32], strides = [1, 1]} : vector<8x128xf32> to vector<8x32xf32>
    %175 = vector.extract_strided_slice %172 {offsets = [0, 0], sizes = [8, 32], strides = [1, 1]} : vector<8x128xf32> to vector<8x32xf32>
    %176 = vector.extract_strided_slice %173 {offsets = [0, 0], sizes = [8, 32], strides = [1, 1]} : vector<8x128xf32> to vector<8x32xf32>
    %cst_86 = arith.constant dense<0.000000e+00> : vector<8x8xf32>
    %177 = tpu.matmul %174, %175, %cst_86 {dimension_numbers = #tpu.dot_dimension_numbers<[1], [1], [0], [0], [0, 0, 1, 0], [], []>} : vector<8x32xf32>, vector<8x32xf32>, vector<8x8xf32> -> vector<8x8xf32>
    %cst_87 = arith.constant 0.176776692 : f32
    %178 = vector.broadcast %cst_87 : f32 to vector<8x8xf32>
    %179 = arith.mulf %177, %178 : vector<8x8xf32>
    %cst_88 = arith.constant dense<0xFF800000> : vector<8xf32>
    %180 = vector.multi_reduction <maximumf>, %179, %cst_88 [1] : vector<8x8xf32> to vector<8xf32>
    %181 = vector.shape_cast %180 : vector<8xf32> to vector<8x1xf32>
    %182 = vector.broadcast %181 : vector<8x1xf32> to vector<8x8xf32>
    %183 = arith.subf %179, %182 : vector<8x8xf32>
    %184 = math.exp %183 : vector<8x8xf32>
    %cst_89 = arith.constant dense<0.000000e+00> : vector<8xf32>
    %185 = vector.multi_reduction <add>, %184, %cst_89 [1] : vector<8x8xf32> to vector<8xf32>
    %186 = vector.shape_cast %185 : vector<8xf32> to vector<8x1xf32>
    %187 = tpu.reciprocal %186 {approx = true} : vector<8x1xf32> -> vector<8x1xf32>
    %188 = vector.broadcast %187 : vector<8x1xf32> to vector<8x8xf32>
    %189 = arith.mulf %184, %188 : vector<8x8xf32>
    %cst_90 = arith.constant dense<0.000000e+00> : vector<8x32xf32>
    %190 = tpu.matmul %189, %176, %cst_90 {dimension_numbers = #tpu.dot_dimension_numbers<[1], [0], [0], [1], [0, 0, 1, 1], [], []>} : vector<8x8xf32>, vector<8x32xf32>, vector<8x32xf32> -> vector<8x32xf32>
    %191 = vector.extract_strided_slice %171 {offsets = [0, 32], sizes = [8, 32], strides = [1, 1]} : vector<8x128xf32> to vector<8x32xf32>
    %192 = vector.extract_strided_slice %172 {offsets = [0, 32], sizes = [8, 32], strides = [1, 1]} : vector<8x128xf32> to vector<8x32xf32>
    %193 = vector.extract_strided_slice %173 {offsets = [0, 32], sizes = [8, 32], strides = [1, 1]} : vector<8x128xf32> to vector<8x32xf32>
    %cst_91 = arith.constant dense<0.000000e+00> : vector<8x8xf32>
    %194 = tpu.matmul %191, %192, %cst_91 {dimension_numbers = #tpu.dot_dimension_numbers<[1], [1], [0], [0], [0, 0, 1, 0], [], []>} : vector<8x32xf32>, vector<8x32xf32>, vector<8x8xf32> -> vector<8x8xf32>
    %cst_92 = arith.constant 0.176776692 : f32
    %195 = vector.broadcast %cst_92 : f32 to vector<8x8xf32>
    %196 = arith.mulf %194, %195 : vector<8x8xf32>
    %cst_93 = arith.constant dense<0xFF800000> : vector<8xf32>
    %197 = vector.multi_reduction <maximumf>, %196, %cst_93 [1] : vector<8x8xf32> to vector<8xf32>
    %198 = vector.shape_cast %197 : vector<8xf32> to vector<8x1xf32>
    %199 = vector.broadcast %198 : vector<8x1xf32> to vector<8x8xf32>
    %200 = arith.subf %196, %199 : vector<8x8xf32>
    %201 = math.exp %200 : vector<8x8xf32>
    %cst_94 = arith.constant dense<0.000000e+00> : vector<8xf32>
    %202 = vector.multi_reduction <add>, %201, %cst_94 [1] : vector<8x8xf32> to vector<8xf32>
    %203 = vector.shape_cast %202 : vector<8xf32> to vector<8x1xf32>
    %204 = tpu.reciprocal %203 {approx = true} : vector<8x1xf32> -> vector<8x1xf32>
    %205 = vector.broadcast %204 : vector<8x1xf32> to vector<8x8xf32>
    %206 = arith.mulf %201, %205 : vector<8x8xf32>
    %cst_95 = arith.constant dense<0.000000e+00> : vector<8x32xf32>
    %207 = tpu.matmul %206, %193, %cst_95 {dimension_numbers = #tpu.dot_dimension_numbers<[1], [0], [0], [1], [0, 0, 1, 1], [], []>} : vector<8x8xf32>, vector<8x32xf32>, vector<8x32xf32> -> vector<8x32xf32>
    %208 = vector.extract_strided_slice %171 {offsets = [0, 64], sizes = [8, 32], strides = [1, 1]} : vector<8x128xf32> to vector<8x32xf32>
    %209 = vector.extract_strided_slice %172 {offsets = [0, 64], sizes = [8, 32], strides = [1, 1]} : vector<8x128xf32> to vector<8x32xf32>
    %210 = vector.extract_strided_slice %173 {offsets = [0, 64], sizes = [8, 32], strides = [1, 1]} : vector<8x128xf32> to vector<8x32xf32>
    %cst_96 = arith.constant dense<0.000000e+00> : vector<8x8xf32>
    %211 = tpu.matmul %208, %209, %cst_96 {dimension_numbers = #tpu.dot_dimension_numbers<[1], [1], [0], [0], [0, 0, 1, 0], [], []>} : vector<8x32xf32>, vector<8x32xf32>, vector<8x8xf32> -> vector<8x8xf32>
    %cst_97 = arith.constant 0.176776692 : f32
    %212 = vector.broadcast %cst_97 : f32 to vector<8x8xf32>
    %213 = arith.mulf %211, %212 : vector<8x8xf32>
    %cst_98 = arith.constant dense<0xFF800000> : vector<8xf32>
    %214 = vector.multi_reduction <maximumf>, %213, %cst_98 [1] : vector<8x8xf32> to vector<8xf32>
    %215 = vector.shape_cast %214 : vector<8xf32> to vector<8x1xf32>
    %216 = vector.broadcast %215 : vector<8x1xf32> to vector<8x8xf32>
    %217 = arith.subf %213, %216 : vector<8x8xf32>
    %218 = math.exp %217 : vector<8x8xf32>
    %cst_99 = arith.constant dense<0.000000e+00> : vector<8xf32>
    %219 = vector.multi_reduction <add>, %218, %cst_99 [1] : vector<8x8xf32> to vector<8xf32>
    %220 = vector.shape_cast %219 : vector<8xf32> to vector<8x1xf32>
    %221 = tpu.reciprocal %220 {approx = true} : vector<8x1xf32> -> vector<8x1xf32>
    %222 = vector.broadcast %221 : vector<8x1xf32> to vector<8x8xf32>
    %223 = arith.mulf %218, %222 : vector<8x8xf32>
    %cst_100 = arith.constant dense<0.000000e+00> : vector<8x32xf32>
    %224 = tpu.matmul %223, %210, %cst_100 {dimension_numbers = #tpu.dot_dimension_numbers<[1], [0], [0], [1], [0, 0, 1, 1], [], []>} : vector<8x8xf32>, vector<8x32xf32>, vector<8x32xf32> -> vector<8x32xf32>
    %225 = vector.extract_strided_slice %171 {offsets = [0, 96], sizes = [8, 32], strides = [1, 1]} : vector<8x128xf32> to vector<8x32xf32>
    %226 = vector.extract_strided_slice %172 {offsets = [0, 96], sizes = [8, 32], strides = [1, 1]} : vector<8x128xf32> to vector<8x32xf32>
    %227 = vector.extract_strided_slice %173 {offsets = [0, 96], sizes = [8, 32], strides = [1, 1]} : vector<8x128xf32> to vector<8x32xf32>
    %cst_101 = arith.constant dense<0.000000e+00> : vector<8x8xf32>
    %228 = tpu.matmul %225, %226, %cst_101 {dimension_numbers = #tpu.dot_dimension_numbers<[1], [1], [0], [0], [0, 0, 1, 0], [], []>} : vector<8x32xf32>, vector<8x32xf32>, vector<8x8xf32> -> vector<8x8xf32>
    %cst_102 = arith.constant 0.176776692 : f32
    %229 = vector.broadcast %cst_102 : f32 to vector<8x8xf32>
    %230 = arith.mulf %228, %229 : vector<8x8xf32>
    %cst_103 = arith.constant dense<0xFF800000> : vector<8xf32>
    %231 = vector.multi_reduction <maximumf>, %230, %cst_103 [1] : vector<8x8xf32> to vector<8xf32>
    %232 = vector.shape_cast %231 : vector<8xf32> to vector<8x1xf32>
    %233 = vector.broadcast %232 : vector<8x1xf32> to vector<8x8xf32>
    %234 = arith.subf %230, %233 : vector<8x8xf32>
    %235 = math.exp %234 : vector<8x8xf32>
    %cst_104 = arith.constant dense<0.000000e+00> : vector<8xf32>
    %236 = vector.multi_reduction <add>, %235, %cst_104 [1] : vector<8x8xf32> to vector<8xf32>
    %237 = vector.shape_cast %236 : vector<8xf32> to vector<8x1xf32>
    %238 = tpu.reciprocal %237 {approx = true} : vector<8x1xf32> -> vector<8x1xf32>
    %239 = vector.broadcast %238 : vector<8x1xf32> to vector<8x8xf32>
    %240 = arith.mulf %235, %239 : vector<8x8xf32>
    %cst_105 = arith.constant dense<0.000000e+00> : vector<8x32xf32>
    %241 = tpu.matmul %240, %227, %cst_105 {dimension_numbers = #tpu.dot_dimension_numbers<[1], [0], [0], [1], [0, 0, 1, 1], [], []>} : vector<8x8xf32>, vector<8x32xf32>, vector<8x32xf32> -> vector<8x32xf32>
    %242 = tpu.concatenate %190, %207, %224, %241 in 1 : vector<8x32xf32>, vector<8x32xf32>, vector<8x32xf32>, vector<8x32xf32> -> vector<8x128xf32>
    %c1_106 = arith.constant 1 : index
    %c0_107 = arith.constant 0 : index
    %c0_108 = arith.constant 0 : index
    %243 = vector.load %arg7[%c1_106, %c0_107, %c0_108] : memref<2x128x128xf32, #tpu.memory_space<vmem>>, vector<1x128x128xf32>
    %244 = vector.shape_cast %243 : vector<1x128x128xf32> to vector<128x128xf32>
    %cst_109 = arith.constant dense<0.000000e+00> : vector<8x128xf32>
    %245 = tpu.matmul %242, %244, %cst_109 {dimension_numbers = #tpu.dot_dimension_numbers<[1], [0], [0], [1], [0, 0, 1, 1], [], []>} : vector<8x128xf32>, vector<128x128xf32>, vector<8x128xf32> -> vector<8x128xf32>
    %c1_110 = arith.constant 1 : index
    %c0_111 = arith.constant 0 : index
    %c0_112 = arith.constant 0 : index
    %246 = vector.load %arg8[%c1_110, %c0_111, %c0_112] : memref<2x1x128xf32, #tpu.memory_space<vmem>>, vector<1x1x128xf32>
    %247 = vector.shape_cast %246 : vector<1x1x128xf32> to vector<1x128xf32>
    %248 = vector.broadcast %247 : vector<1x128xf32> to vector<8x128xf32>
    %249 = arith.addf %245, %248 : vector<8x128xf32>
    %250 = arith.addf %163, %249 : vector<8x128xf32>
    %c1_113 = arith.constant 1 : index
    %c0_114 = arith.constant 0 : index
    %c0_115 = arith.constant 0 : index
    %251 = vector.load %arg9[%c1_113, %c0_114, %c0_115] : memref<2x1x128xf32, #tpu.memory_space<vmem>>, vector<1x1x128xf32>
    %252 = vector.shape_cast %251 : vector<1x1x128xf32> to vector<1x128xf32>
    %c1_116 = arith.constant 1 : index
    %c0_117 = arith.constant 0 : index
    %c0_118 = arith.constant 0 : index
    %253 = vector.load %arg10[%c1_116, %c0_117, %c0_118] : memref<2x1x128xf32, #tpu.memory_space<vmem>>, vector<1x1x128xf32>
    %254 = vector.shape_cast %253 : vector<1x1x128xf32> to vector<1x128xf32>
    %cst_119 = arith.constant dense<0.000000e+00> : vector<8xf32>
    %255 = vector.multi_reduction <add>, %250, %cst_119 [1] : vector<8x128xf32> to vector<8xf32>
    %256 = vector.shape_cast %255 : vector<8xf32> to vector<8x1xf32>
    %cst_120 = arith.constant 1.280000e+02 : f32
    %257 = vector.broadcast %cst_120 : f32 to vector<8x1xf32>
    %258 = arith.divf %256, %257 : vector<8x1xf32>
    %259 = vector.broadcast %258 : vector<8x1xf32> to vector<8x128xf32>
    %260 = arith.subf %250, %259 : vector<8x128xf32>
    %261 = arith.mulf %260, %260 : vector<8x128xf32>
    %cst_121 = arith.constant dense<0.000000e+00> : vector<8xf32>
    %262 = vector.multi_reduction <add>, %261, %cst_121 [1] : vector<8x128xf32> to vector<8xf32>
    %263 = vector.shape_cast %262 : vector<8xf32> to vector<8x1xf32>
    %cst_122 = arith.constant 1.280000e+02 : f32
    %264 = vector.broadcast %cst_122 : f32 to vector<8x1xf32>
    %265 = arith.divf %263, %264 : vector<8x1xf32>
    %cst_123 = arith.constant 9.99999974E-6 : f32
    %266 = vector.broadcast %cst_123 : f32 to vector<8x1xf32>
    %267 = arith.addf %265, %266 : vector<8x1xf32>
    %268 = math.rsqrt %267 : vector<8x1xf32>
    %269 = vector.broadcast %268 : vector<8x1xf32> to vector<8x128xf32>
    %270 = arith.mulf %260, %269 : vector<8x128xf32>
    %271 = vector.broadcast %252 : vector<1x128xf32> to vector<8x128xf32>
    %272 = arith.mulf %270, %271 : vector<8x128xf32>
    %273 = vector.broadcast %254 : vector<1x128xf32> to vector<8x128xf32>
    %274 = arith.addf %272, %273 : vector<8x128xf32>
    %c1_124 = arith.constant 1 : index
    %c0_125 = arith.constant 0 : index
    %c0_126 = arith.constant 0 : index
    %275 = vector.load %arg11[%c1_124, %c0_125, %c0_126] : memref<2x128x128xf32, #tpu.memory_space<vmem>>, vector<1x128x128xf32>
    %276 = vector.shape_cast %275 : vector<1x128x128xf32> to vector<128x128xf32>
    %cst_127 = arith.constant dense<0.000000e+00> : vector<8x128xf32>
    %277 = tpu.matmul %274, %276, %cst_127 {dimension_numbers = #tpu.dot_dimension_numbers<[1], [0], [0], [1], [0, 0, 1, 1], [], []>} : vector<8x128xf32>, vector<128x128xf32>, vector<8x128xf32> -> vector<8x128xf32>
    %c1_128 = arith.constant 1 : index
    %c0_129 = arith.constant 0 : index
    %c0_130 = arith.constant 0 : index
    %278 = vector.load %arg12[%c1_128, %c0_129, %c0_130] : memref<2x1x128xf32, #tpu.memory_space<vmem>>, vector<1x1x128xf32>
    %279 = vector.shape_cast %278 : vector<1x1x128xf32> to vector<1x128xf32>
    %280 = vector.broadcast %279 : vector<1x128xf32> to vector<8x128xf32>
    %281 = arith.addf %277, %280 : vector<8x128xf32>
    %cst_131 = arith.constant 0.000000e+00 : f32
    %282 = vector.broadcast %cst_131 : f32 to vector<8x128xf32>
    %283 = arith.maximumf %281, %282 : vector<8x128xf32>
    %c1_132 = arith.constant 1 : index
    %c0_133 = arith.constant 0 : index
    %c0_134 = arith.constant 0 : index
    %284 = vector.load %arg13[%c1_132, %c0_133, %c0_134] : memref<2x128x128xf32, #tpu.memory_space<vmem>>, vector<1x128x128xf32>
    %285 = vector.shape_cast %284 : vector<1x128x128xf32> to vector<128x128xf32>
    %cst_135 = arith.constant dense<0.000000e+00> : vector<8x128xf32>
    %286 = tpu.matmul %283, %285, %cst_135 {dimension_numbers = #tpu.dot_dimension_numbers<[1], [0], [0], [1], [0, 0, 1, 1], [], []>} : vector<8x128xf32>, vector<128x128xf32>, vector<8x128xf32> -> vector<8x128xf32>
    %c1_136 = arith.constant 1 : index
    %c0_137 = arith.constant 0 : index
    %c0_138 = arith.constant 0 : index
    %287 = vector.load %arg14[%c1_136, %c0_137, %c0_138] : memref<2x1x128xf32, #tpu.memory_space<vmem>>, vector<1x1x128xf32>
    %288 = vector.shape_cast %287 : vector<1x1x128xf32> to vector<1x128xf32>
    %289 = vector.broadcast %288 : vector<1x128xf32> to vector<8x128xf32>
    %290 = arith.addf %286, %289 : vector<8x128xf32>
    %291 = arith.addf %274, %290 : vector<8x128xf32>
    %c1_139 = arith.constant 1 : index
    %c0_140 = arith.constant 0 : index
    %c0_141 = arith.constant 0 : index
    %292 = vector.load %arg15[%c1_139, %c0_140, %c0_141] : memref<2x1x128xf32, #tpu.memory_space<vmem>>, vector<1x1x128xf32>
    %293 = vector.shape_cast %292 : vector<1x1x128xf32> to vector<1x128xf32>
    %c1_142 = arith.constant 1 : index
    %c0_143 = arith.constant 0 : index
    %c0_144 = arith.constant 0 : index
    %294 = vector.load %arg16[%c1_142, %c0_143, %c0_144] : memref<2x1x128xf32, #tpu.memory_space<vmem>>, vector<1x1x128xf32>
    %295 = vector.shape_cast %294 : vector<1x1x128xf32> to vector<1x128xf32>
    %cst_145 = arith.constant dense<0.000000e+00> : vector<8xf32>
    %296 = vector.multi_reduction <add>, %291, %cst_145 [1] : vector<8x128xf32> to vector<8xf32>
    %297 = vector.shape_cast %296 : vector<8xf32> to vector<8x1xf32>
    %cst_146 = arith.constant 1.280000e+02 : f32
    %298 = vector.broadcast %cst_146 : f32 to vector<8x1xf32>
    %299 = arith.divf %297, %298 : vector<8x1xf32>
    %300 = vector.broadcast %299 : vector<8x1xf32> to vector<8x128xf32>
    %301 = arith.subf %291, %300 : vector<8x128xf32>
    %302 = arith.mulf %301, %301 : vector<8x128xf32>
    %cst_147 = arith.constant dense<0.000000e+00> : vector<8xf32>
    %303 = vector.multi_reduction <add>, %302, %cst_147 [1] : vector<8x128xf32> to vector<8xf32>
    %304 = vector.shape_cast %303 : vector<8xf32> to vector<8x1xf32>
    %cst_148 = arith.constant 1.280000e+02 : f32
    %305 = vector.broadcast %cst_148 : f32 to vector<8x1xf32>
    %306 = arith.divf %304, %305 : vector<8x1xf32>
    %cst_149 = arith.constant 9.99999974E-6 : f32
    %307 = vector.broadcast %cst_149 : f32 to vector<8x1xf32>
    %308 = arith.addf %306, %307 : vector<8x1xf32>
    %309 = math.rsqrt %308 : vector<8x1xf32>
    %310 = vector.broadcast %309 : vector<8x1xf32> to vector<8x128xf32>
    %311 = arith.mulf %301, %310 : vector<8x128xf32>
    %312 = vector.broadcast %293 : vector<1x128xf32> to vector<8x128xf32>
    %313 = arith.mulf %311, %312 : vector<8x128xf32>
    %314 = vector.broadcast %295 : vector<1x128xf32> to vector<8x128xf32>
    %315 = arith.addf %313, %314 : vector<8x128xf32>
    %c0_150 = arith.constant 0 : index
    %c0_151 = arith.constant 0 : index
    %c0_152 = arith.constant 0 : index
    %316 = vector.load %arg21[%c0_150, %c0_151, %c0_152] : memref<1x8x128xf32, #tpu.memory_space<vmem>>, vector<1x8x128xf32>
    %317 = vector.shape_cast %316 : vector<1x8x128xf32> to vector<8x128xf32>
    %318 = vector.shape_cast %315 : vector<8x128xf32> to vector<1x8x128xf32>
    tpu.vector_store %arg21[%c0_150, %c0_151, %c0_152], %318 {strides = array<i32>} : memref<1x8x128xf32, #tpu.memory_space<vmem>>, vector<1x8x128xf32>,
    %c0_153 = arith.constant 0 : index
    %c0_154 = arith.constant 0 : index
    %319 = vector.load %arg17[%c0_153, %c0_154] : memref<128x128xf32, #tpu.memory_space<vmem>>, vector<128x128xf32>
    %cst_155 = arith.constant dense<0.000000e+00> : vector<8x128xf32>
    %320 = tpu.matmul %315, %319, %cst_155 {dimension_numbers = #tpu.dot_dimension_numbers<[1], [0], [0], [1], [0, 0, 1, 1], [], []>} : vector<8x128xf32>, vector<128x128xf32>, vector<8x128xf32> -> vector<8x128xf32>
    %c0_156 = arith.constant 0 : index
    %c0_157 = arith.constant 0 : index
    %321 = vector.load %arg18[%c0_156, %c0_157] : memref<1x128xf32, #tpu.memory_space<vmem>>, vector<1x128xf32>
    %322 = vector.broadcast %321 : vector<1x128xf32> to vector<8x128xf32>
    %323 = arith.addf %320, %322 : vector<8x128xf32>
    %cst_158 = arith.constant 0.000000e+00 : f32
    %324 = vector.broadcast %cst_158 : f32 to vector<8x128xf32>
    %325 = arith.maximumf %323, %324 : vector<8x128xf32>
    %c0_159 = arith.constant 0 : index
    %c0_160 = arith.constant 0 : index
    %326 = vector.load %arg19[%c0_159, %c0_160] : memref<128x128xf32, #tpu.memory_space<vmem>>, vector<128x128xf32>
    %cst_161 = arith.constant dense<0.000000e+00> : vector<8x128xf32>
    %327 = tpu.matmul %325, %326, %cst_161 {dimension_numbers = #tpu.dot_dimension_numbers<[1], [0], [0], [1], [0, 0, 1, 1], [], []>} : vector<8x128xf32>, vector<128x128xf32>, vector<8x128xf32> -> vector<8x128xf32>
    %c0_162 = arith.constant 0 : index
    %c0_163 = arith.constant 0 : index
    %328 = vector.load %arg20[%c0_162, %c0_163] : memref<1x128xf32, #tpu.memory_space<vmem>>, vector<1x128xf32>
    %329 = vector.broadcast %328 : vector<1x128xf32> to vector<8x128xf32>
    %330 = arith.addf %327, %329 : vector<8x128xf32>
    %331 = arith.mulf %330, %330 : vector<8x128xf32>
    %cst_164 = arith.constant dense<0.000000e+00> : vector<8xf32>
    %332 = vector.multi_reduction <add>, %331, %cst_164 [1] : vector<8x128xf32> to vector<8xf32>
    %333 = vector.shape_cast %332 : vector<8xf32> to vector<8x1xf32>
    %cst_165 = arith.constant 1.000000e-24 : f32
    %334 = vector.broadcast %cst_165 : f32 to vector<8x1xf32>
    %335 = arith.maximumf %333, %334 : vector<8x1xf32>
    %336 = math.rsqrt %335 : vector<8x1xf32>
    %337 = vector.broadcast %336 : vector<8x1xf32> to vector<8x128xf32>
    %338 = arith.mulf %330, %337 : vector<8x128xf32>
    %c0_166 = arith.constant 0 : index
    %c0_167 = arith.constant 0 : index
    %c0_168 = arith.constant 0 : index
    %339 = vector.load %arg22[%c0_166, %c0_167, %c0_168] : memref<1x8x128xf32, #tpu.memory_space<vmem>>, vector<1x8x128xf32>
    %340 = vector.shape_cast %339 : vector<1x8x128xf32> to vector<8x128xf32>
    %341 = vector.shape_cast %338 : vector<8x128xf32> to vector<1x8x128xf32>
    tpu.vector_store %arg22[%c0_166, %c0_167, %c0_168], %341 {strides = array<i32>} : memref<1x8x128xf32, #tpu.memory_space<vmem>>, vector<1x8x128xf32>,
    return
  }
  func.func @transform_0(%arg0: i32) -> (i32, i32, i32) {
    %c0_i32 = arith.constant 0 : i32
    %c0_i32_0 = arith.constant 0 : i32
    %c0_i32_1 = arith.constant 0 : i32
    return %arg0, %c0_i32, %c0_i32_0 : i32, i32, i32
  }
  func.func @transform_1(%arg0: i32) -> (i32, i32) {
    %c0_i32 = arith.constant 0 : i32
    %c0_i32_0 = arith.constant 0 : i32
    %c0_i32_1 = arith.constant 0 : i32
    return %c0_i32, %c0_i32_0 : i32, i32
  }
  func.func @transform_2(%arg0: i32) -> (i32, i32) {
    %c0_i32 = arith.constant 0 : i32
    %c0_i32_0 = arith.constant 0 : i32
    %c0_i32_1 = arith.constant 0 : i32
    return %c0_i32, %c0_i32_0 : i32, i32
  }
  func.func @transform_3(%arg0: i32) -> (i32, i32) {
    %c0_i32 = arith.constant 0 : i32
    %c0_i32_0 = arith.constant 0 : i32
    %c0_i32_1 = arith.constant 0 : i32
    return %c0_i32, %c0_i32_0 : i32, i32
  }
  func.func @transform_4(%arg0: i32) -> (i32, i32, i32) {
    %c0_i32 = arith.constant 0 : i32
    %c0_i32_0 = arith.constant 0 : i32
    %c0_i32_1 = arith.constant 0 : i32
    %c0_i32_2 = arith.constant 0 : i32
    return %c0_i32, %c0_i32_0, %c0_i32_1 : i32, i32, i32
  }
  func.func @transform_5(%arg0: i32) -> (i32, i32, i32) {
    %c0_i32 = arith.constant 0 : i32
    %c0_i32_0 = arith.constant 0 : i32
    %c0_i32_1 = arith.constant 0 : i32
    %c0_i32_2 = arith.constant 0 : i32
    return %c0_i32, %c0_i32_0, %c0_i32_1 : i32, i32, i32
  }
  func.func @transform_6(%arg0: i32) -> (i32, i32, i32) {
    %c0_i32 = arith.constant 0 : i32
    %c0_i32_0 = arith.constant 0 : i32
    %c0_i32_1 = arith.constant 0 : i32
    %c0_i32_2 = arith.constant 0 : i32
    return %c0_i32, %c0_i32_0, %c0_i32_1 : i32, i32, i32
  }
  func.func @transform_7(%arg0: i32) -> (i32, i32, i32) {
    %c0_i32 = arith.constant 0 : i32
    %c0_i32_0 = arith.constant 0 : i32
    %c0_i32_1 = arith.constant 0 : i32
    %c0_i32_2 = arith.constant 0 : i32
    return %c0_i32, %c0_i32_0, %c0_i32_1 : i32, i32, i32
  }
  func.func @transform_8(%arg0: i32) -> (i32, i32, i32) {
    %c0_i32 = arith.constant 0 : i32
    %c0_i32_0 = arith.constant 0 : i32
    %c0_i32_1 = arith.constant 0 : i32
    %c0_i32_2 = arith.constant 0 : i32
    return %c0_i32, %c0_i32_0, %c0_i32_1 : i32, i32, i32
  }
  func.func @transform_9(%arg0: i32) -> (i32, i32, i32) {
    %c0_i32 = arith.constant 0 : i32
    %c0_i32_0 = arith.constant 0 : i32
    %c0_i32_1 = arith.constant 0 : i32
    %c0_i32_2 = arith.constant 0 : i32
    return %c0_i32, %c0_i32_0, %c0_i32_1 : i32, i32, i32
  }
  func.func @transform_10(%arg0: i32) -> (i32, i32, i32) {
    %c0_i32 = arith.constant 0 : i32
    %c0_i32_0 = arith.constant 0 : i32
    %c0_i32_1 = arith.constant 0 : i32
    %c0_i32_2 = arith.constant 0 : i32
    return %c0_i32, %c0_i32_0, %c0_i32_1 : i32, i32, i32
  }
  func.func @transform_11(%arg0: i32) -> (i32, i32, i32) {
    %c0_i32 = arith.constant 0 : i32
    %c0_i32_0 = arith.constant 0 : i32
    %c0_i32_1 = arith.constant 0 : i32
    %c0_i32_2 = arith.constant 0 : i32
    return %c0_i32, %c0_i32_0, %c0_i32_1 : i32, i32, i32
  }
  func.func @transform_12(%arg0: i32) -> (i32, i32, i32) {
    %c0_i32 = arith.constant 0 : i32
    %c0_i32_0 = arith.constant 0 : i32
    %c0_i32_1 = arith.constant 0 : i32
    %c0_i32_2 = arith.constant 0 : i32
    return %c0_i32, %c0_i32_0, %c0_i32_1 : i32, i32, i32
  }
  func.func @transform_13(%arg0: i32) -> (i32, i32, i32) {
    %c0_i32 = arith.constant 0 : i32
    %c0_i32_0 = arith.constant 0 : i32
    %c0_i32_1 = arith.constant 0 : i32
    %c0_i32_2 = arith.constant 0 : i32
    return %c0_i32, %c0_i32_0, %c0_i32_1 : i32, i32, i32
  }
  func.func @transform_14(%arg0: i32) -> (i32, i32, i32) {
    %c0_i32 = arith.constant 0 : i32
    %c0_i32_0 = arith.constant 0 : i32
    %c0_i32_1 = arith.constant 0 : i32
    %c0_i32_2 = arith.constant 0 : i32
    return %c0_i32, %c0_i32_0, %c0_i32_1 : i32, i32, i32
  }
  func.func @transform_15(%arg0: i32) -> (i32, i32, i32) {
    %c0_i32 = arith.constant 0 : i32
    %c0_i32_0 = arith.constant 0 : i32
    %c0_i32_1 = arith.constant 0 : i32
    %c0_i32_2 = arith.constant 0 : i32
    return %c0_i32, %c0_i32_0, %c0_i32_1 : i32, i32, i32
  }
  func.func @transform_16(%arg0: i32) -> (i32, i32) {
    %c0_i32 = arith.constant 0 : i32
    %c0_i32_0 = arith.constant 0 : i32
    %c0_i32_1 = arith.constant 0 : i32
    return %c0_i32, %c0_i32_0 : i32, i32
  }
  func.func @transform_17(%arg0: i32) -> (i32, i32) {
    %c0_i32 = arith.constant 0 : i32
    %c0_i32_0 = arith.constant 0 : i32
    %c0_i32_1 = arith.constant 0 : i32
    return %c0_i32, %c0_i32_0 : i32, i32
  }
  func.func @transform_18(%arg0: i32) -> (i32, i32) {
    %c0_i32 = arith.constant 0 : i32
    %c0_i32_0 = arith.constant 0 : i32
    %c0_i32_1 = arith.constant 0 : i32
    return %c0_i32, %c0_i32_0 : i32, i32
  }
  func.func @transform_19(%arg0: i32) -> (i32, i32) {
    %c0_i32 = arith.constant 0 : i32
    %c0_i32_0 = arith.constant 0 : i32
    %c0_i32_1 = arith.constant 0 : i32
    return %c0_i32, %c0_i32_0 : i32, i32
  }
  func.func @transform_20(%arg0: i32) -> (i32, i32, i32) {
    %c0_i32 = arith.constant 0 : i32
    %c0_i32_0 = arith.constant 0 : i32
    %c0_i32_1 = arith.constant 0 : i32
    return %arg0, %c0_i32, %c0_i32_0 : i32, i32, i32
  }
  func.func @transform_21(%arg0: i32) -> (i32, i32, i32) {
    %c0_i32 = arith.constant 0 : i32
    %c0_i32_0 = arith.constant 0 : i32
    %c0_i32_1 = arith.constant 0 : i32
    return %arg0, %c0_i32, %c0_i32_0 : i32, i32, i32
  }
}

</mosaic_0001>

<bundles_post_ra>
// kernel: temporal_encoder_forward.1
= control target key start
LH: loop header
LB: loop body
LE: loop exit
PB: predicated region body
PF: predicated region fallthrough
CT: control target
= control target key end

     0   :  { %s3940_s0 = inlined_call_operand.hbm [shape: f32[2,8,257], index: 0, kind: input, shape index: {}]   ;;  %s3941_s1 = inlined_call_operand.hbm [shape: f32[256,128], index: 1, kind: input, shape index: {}]   ;;  %s3942_s2 = inlined_call_operand.hbm [shape: f32[1,128], index: 2, kind: input, shape index: {}]   ;;  %s3943_s3 = inlined_call_operand.vmem [shape: f32[8,128], index: 3, kind: input, shape index: {}]   ;;  %s3944_s4 = inlined_call_operand.hbm [shape: f32[2,128,384], index: 4, kind: input, shape index: {}]   ;;  %s3945_s5 = inlined_call_operand.hbm [shape: f32[2,1,384], index: 5, kind: input, shape index: {}]   ;;  %s3946_s6 = inlined_call_operand.hbm [shape: f32[2,128,128], index: 6, kind: input, shape index: {}]   ;;  %s3947_s7 = inlined_call_operand.vmem [shape: f32[2,1,128], index: 7, kind: input, shape index: {}]   ;;  %s3948_s8 = inlined_call_operand.vmem [shape: f32[2,1,128], index: 8, kind: input, shape index: {}]   ;;  %s3949_s9 = inlined_call_operand.hbm [shape: f32[2,1,128], index: 9, kind: input, shape index: {}]   ;;  %s3950_s10 = inlined_call_operand.hbm [shape: f32[2,128,128], index: 10, kind: input, shape index: {}]   ;;  %s3951_s11 = inlined_call_operand.hbm [shape: f32[2,1,128], index: 11, kind: input, shape index: {}]   ;;  %s3952_s12 = inlined_call_operand.hbm [shape: f32[2,128,128], index: 12, kind: input, shape index: {}]   ;;  %s3953_s13 = inlined_call_operand.hbm [shape: f32[2,1,128], index: 13, kind: input, shape index: {}]   ;;  %s3954_s14 = inlined_call_operand.hbm [shape: f32[2,1,128], index: 14, kind: input, shape index: {}]   ;;  %s3955_s15 = inlined_call_operand.hbm [shape: f32[2,1,128], index: 15, kind: input, shape index: {}]   ;;  %s3956_s16 = inlined_call_operand.hbm [shape: f32[128,128], index: 16, kind: input, shape index: {}]   ;;  %s3957_s17 = inlined_call_operand.vmem [shape: f32[1,128], index: 17, kind: input, shape index: {}]   ;;  %s3958_s18 = inlined_call_operand.hbm [shape: f32[128,128], index: 18, kind: input, shape index: {}]   ;;  %s3959_s19 = inlined_call_operand.hbm [shape: f32[1,128], index: 19, kind: input, shape index: {}]   ;;  %s3960_s20 = inlined_call_operand.vmem [shape: f32[2,8,128], index: 20, kind: output, shape index: {0}]   ;;  %s3961_s21 = inlined_call_operand.vmem [shape: f32[2,8,128], index: 21, kind: output, shape index: {1}]  }
   0x1   :  { %3968 = sst [smem:[#allocation38_spill]] %s3940_s0 }
   0x2   :  { %3969 = sst [smem:[#allocation39_spill]] %s3941_s1 }
   0x3   :  { %3970 = sst [smem:[#allocation40_spill]] %s3942_s2 }
   0x4   :  { %3971 = sst [smem:[#allocation41_spill]] %s3943_s3 }
   0x5   :  { %3972 = sst [smem:[#allocation42_spill]] %s3944_s4 }
   0x6   :  { %3973 = sst [smem:[#allocation43_spill]] %s3945_s5 }
   0x7   :  { %3974 = sst [smem:[#allocation44_spill]] %s3946_s6 }
   0x8   :  { %3975 = sst [smem:[#allocation45_spill]] %s3947_s7 }
   0x9   :  { %3976 = sst [smem:[#allocation46_spill]] %s3948_s8 }
   0xa   :  { %3977 = sst [smem:[#allocation47_spill]] %s3950_s10 }
   0xb   :  { %3978 = sst [smem:[#allocation48_spill]] %s3957_s17 }
   0xc   :  { %3979 = sst [smem:[#allocation49_spill]] %s3959_s19 }
   0xd   :  { %3980 = sst [smem:[#allocation50_spill]] %s3960_s20 }
   0xe   :  { %3981 = sst [smem:[#allocation51_spill]] %s3961_s21 }
   0xf   :  { %27 = vsyncpa [#allocation3], 0 }
  0x10   :  { %29 = vsyncpa [#allocation3 + $0x1], 0 }
  0x11   :  { %30 = vsyncpa [#allocation5], 0 }
  0x12   :  { %31 = vsyncpa [#allocation8], 0 }
  0x13   :  { %32 = vsyncpa [#allocation11], 0 }
  0x14   :  { %33 = vsyncpa [#allocation14], 0 }
  0x15   :  { %34 = vsyncpa [#allocation17], 0 }
  0x16   :  { %35 = vsyncpa [#allocation20], 0 }
  0x17   :  { %36 = vsyncpa [#allocation23], 0 }
  0x18   :  { %37 = vsyncpa [#allocation26], 0  ;;  %s3535_s2 = smov 0   ;;  %s3537_s25 = smov 0  }
  0x19   :  { %s3539_s26 = smov 0   ;;  %s3541_s27 = smov 0  }
  0x1a LB: > { %s3982_s29 = sld [smem:[#allocation39_spill]]  ;;  %s3559_s4 = sadd.s32 4294967295, %s3396_s27   ;;  %s3396_s27 = sphi %s3541_s27, %s4008_s27   ;;  %s3392_s26 = sphi %s3539_s26, %s4007_s26   ;;  %s3388_s25 = sphi %s3537_s25, %s4006_s25   ;;  %s3384_s2 = sphi %s3535_s2, %s4005_s2  }
  0x1b   : > { %3983 = sst [smem:[#allocation36_spill]] %s3559_s4  ;;  %p2520_p0 = scmp.ge.s32.totalorder %s3396_s27, 1 }
  0x1c   : > { %p64_p1 = scmp.eq.s32.totalorder %s3559_s4, 0  ;;  %p525_p2 = scmp.lt.s32.totalorder %s3396_s27, 3 }
  0x1d   : > { %s3398_s5 = smov [#allocation4]   ;;  %s3986_s24 = sld [smem:[#allocation42_spill]] }
  0x1e   : > { %p3564_p3 = pnand %p2520_p0, %p525_p2  ;;  %s538_s22 = sshll.u32 %s3398_s5, 4  ;;  %s539_s22 = int_to_ptr.vmem [resolvable:$true] %s538_s22 }
  0x1f   : > { %s3400_s17 = smov 128   ;;  %s3401_s5 = smov 8  }
  0x20   : > { %s536_s0 = sshll.u32 %s3982_s29, 4  ;;  %p2649_p4 = pneg %p3564_p3  ;;  %s537_s0 = int_to_ptr.hbm [resolvable:$true] %s536_s0 }
  0x21   : > { %s3984_s30 = scalar_select %p3564_p3, 1, 0 }
  0x22   : > { %p3575_p5 = pnand %p2649_p4, %p64_p1  ;;  %s3399_s29 = smov [#allocation7]  }
  0x23   : > { %3985 = sst [smem:[#allocation37_spill]] %s3984_s30  ;;  %s565_s3 = sshll.u32 %s3986_s24, 4  ;;  %s566_s3 = int_to_ptr.hbm [resolvable:$true] %s565_s3 }
  0x24   : > { %s567_s21 = sshll.u32 %s3399_s29, 4  ;;  %s3402_s23 = smov 384   ;;  %s568_s21 = int_to_ptr.vmem [resolvable:$true] %s567_s21 }
  0x25   : > { %2652 = dma.hbm_to_vmem [thread:$0]  (!%p3575_p5), %s537_s0, 4096, %s539_s22, [#allocation5], %s3400_s17, %s3400_s17, %s3401_s5  }
  0x26   : > { %s3403_s1 = smov 24   ;;  %s3988_s6 = sld [smem:[#allocation44_spill]] }
  0x27   : > { %2658 = dma.hbm_to_vmem [thread:$0]  (!%p3575_p5), %s566_s3, 12288, %s568_s21, [#allocation8], %s3402_s23, %s3402_s23, %s3403_s1  }
  0x28   : > { %s3404_s7 = smov [#allocation10]   ;;  %s3989_s10 = sld [smem:[#allocation47_spill]] }
  0x29   : > { %s595_s29 = sshll.u32 %s3404_s7, 4  ;;  %s3405_s21 = smov [#allocation13]   ;;  %s596_s29 = int_to_ptr.vmem [resolvable:$true] %s595_s29 }
  0x2a   : > { %s629_s0 = sshll.u32 %s3405_s21, 4  ;;  %s655_s3 = sshll.u32 %s3952_s12, 4  ;;  %s630_s0 = int_to_ptr.vmem [resolvable:$true] %s629_s0  ;;  %s656_s3 = int_to_ptr.hbm [resolvable:$true] %s655_s3 }
  0x2b   : > { %s3406_s7 = smov [#allocation16]   ;;  %s683_s23 = sshll.u32 %s3954_s14, 4  ;;  %s684_s23 = int_to_ptr.hbm [resolvable:$true] %s683_s23 }
  0x2c   : > { %s593_s8 = sshll.u32 %s3988_s6, 4  ;;  %s657_s4 = sshll.u32 %s3406_s7, 4  ;;  %s594_s8 = int_to_ptr.hbm [resolvable:$true] %s593_s8  ;;  %s658_s4 = int_to_ptr.vmem [resolvable:$true] %s657_s4 }
  0x2d   : > { %2664 = dma.hbm_to_vmem [thread:$0]  (!%p3575_p5), %s594_s8, 4096, %s596_s29, [#allocation11], %s3400_s17, %s3400_s17, %s3401_s5  }
  0x2e   : > { %s627_s19 = sshll.u32 %s3989_s10, 4  ;;  %s3407_s1 = smov [#allocation19]   ;;  %s628_s19 = int_to_ptr.hbm [resolvable:$true] %s627_s19 }
  0x2f   : > { %2670 = dma.hbm_to_vmem [thread:$0]  (!%p3575_p5), %s628_s19, 4096, %s630_s0, [#allocation14], %s3400_s17, %s3400_s17, %s3401_s5  }
  0x30   : > { %2676 = dma.hbm_to_vmem [thread:$0]  (!%p3575_p5), %s656_s3, 4096, %s658_s4, [#allocation17], %s3400_s17, %s3400_s17, %s3401_s5  }
  0x31   : > { %s685_s24 = sshll.u32 %s3407_s1, 4  ;;  %s711_s19 = sshll.u32 %s3956_s16, 4  ;;  %s686_s24 = int_to_ptr.vmem [resolvable:$true] %s685_s24  ;;  %s712_s19 = int_to_ptr.hbm [resolvable:$true] %s711_s19 }
  0x32   : > { %s3408_s0 = smov 16   ;;  %s3409_s22 = smov 1  }
  0x33   : > { %2682 = dma.hbm_to_vmem [thread:$0]  (!%p3575_p5), %s684_s23, 32, %s686_s24, [#allocation20], %s3408_s0, %s3408_s0, %s3409_s22  }
  0x34   : > { %s3990_s3 = sld [smem:[#allocation40_spill]]  ;;  %s3410_s30 = smov [#allocation22]  }
  0x35   : > { %s713_s8 = sshll.u32 %s3410_s30, 4  ;;  %s3411_s1 = smov [#allocation6]   ;;  %s714_s8 = int_to_ptr.vmem [resolvable:$true] %s713_s8 }
  0x36   : > { %2688 = dma.hbm_to_vmem [thread:$0]  (!%p3575_p5), %s712_s19, 2048, %s714_s8, [#allocation23], %s3400_s17, %s3400_s17, %s3401_s5  }
  0x37   : > { %s553_s29 = sshll.u32 %s3411_s1, 4  ;;  %s3991_s10 = sld [smem:[#allocation43_spill]]  ;;  %s554_s29 = int_to_ptr.vmem [resolvable:$true] %s553_s29 }
  0x38   : > { %s3412_s24 = smov [#allocation9]   ;;  %s613_s30 = sshll.u32 %s3949_s9, 4  ;;  %s614_s30 = int_to_ptr.hbm [resolvable:$true] %s613_s30 }
  0x39   : > { %s581_s20 = sshll.u32 %s3412_s24, 4  ;;  %s3413_s19 = smov 48   ;;  %s582_s20 = int_to_ptr.vmem [resolvable:$true] %s581_s20 }
  0x3a   : > { %s551_s4 = sshll.u32 %s3990_s3, 4  ;;  %s3414_s8 = smov 3   ;;  %s552_s4 = int_to_ptr.hbm [resolvable:$true] %s551_s4 }
  0x3b   : > { %2655 = dma.hbm_to_vmem [thread:$0]  (!%p3575_p5), %s552_s4, 16, %s554_s29, [#allocation5]  }
  0x3c   : > { %s3415_s6 = smov [#allocation12]   ;;  %s641_s4 = sshll.u32 %s3951_s11, 4  ;;  %s642_s4 = int_to_ptr.hbm [resolvable:$true] %s641_s4 }
  0x3d   : > { %s579_s23 = sshll.u32 %s3991_s10, 4  ;;  %s615_s10 = sshll.u32 %s3415_s6, 4  ;;  %s580_s23 = int_to_ptr.hbm [resolvable:$true] %s579_s23  ;;  %s616_s10 = int_to_ptr.vmem [resolvable:$true] %s615_s10 }
  0x3e   : > { %2661 = dma.hbm_to_vmem [thread:$0]  (!%p3575_p5), %s580_s23, 96, %s582_s20, [#allocation8], %s3413_s19, %s3413_s19, %s3414_s8  }
  0x3f   : > { %2667 = dma.hbm_to_vmem [thread:$0]  (!%p3575_p5), %s614_s30, 32, %s616_s10, [#allocation11], %s3408_s0, %s3408_s0, %s3409_s22  }
  0x40   : > { %s669_s7 = sshll.u32 %s3953_s13, 4  ;;  %s3416_s23 = smov [#allocation15]   ;;  %s670_s7 = int_to_ptr.hbm [resolvable:$true] %s669_s7 }
  0x41   : > { %s643_s20 = sshll.u32 %s3416_s23, 4  ;;  %s3417_s3 = smov [#allocation18]   ;;  %s644_s20 = int_to_ptr.vmem [resolvable:$true] %s643_s20 }
  0x42   : > { %2673 = dma.hbm_to_vmem [thread:$0]  (!%p3575_p5), %s642_s4, 32, %s644_s20, [#allocation14], %s3408_s0, %s3408_s0, %s3409_s22  }
  0x43   : > { %s671_s19 = sshll.u32 %s3417_s3, 4  ;;  %s697_s30 = sshll.u32 %s3955_s15, 4  ;;  %s672_s19 = int_to_ptr.vmem [resolvable:$true] %s671_s19  ;;  %s698_s30 = int_to_ptr.hbm [resolvable:$true] %s697_s30 }
  0x44   : > { %2679 = dma.hbm_to_vmem [thread:$0]  (!%p3575_p5), %s670_s7, 32, %s672_s19, [#allocation17], %s3408_s0, %s3408_s0, %s3409_s22  }
  0x45   : > { %s728_s21 = sshll.u32 %s3958_s18, 4  ;;  %s3418_s4 = smov [#allocation21]   ;;  %s729_s21 = int_to_ptr.hbm [resolvable:$true] %s728_s21 }
  0x46   : > { %s699_s29 = sshll.u32 %s3418_s4, 4  ;;  %s3419_s24 = smov [#allocation24]   ;;  %s700_s29 = int_to_ptr.vmem [resolvable:$true] %s699_s29 }
  0x47   : > { %2685 = dma.hbm_to_vmem [thread:$0]  (!%p3575_p5), %s698_s30, 32, %s700_s29, [#allocation20], %s3408_s0, %s3408_s0, %s3409_s22  }
  0x48   : > { %s730_s7 = sshll.u32 %s3419_s24, 4  ;;  %s3992_s3 = sld [smem:[#allocation49_spill]]  ;;  %s731_s7 = int_to_ptr.vmem [resolvable:$true] %s730_s7 }
  0x49   : > { %2691 = dma.hbm_to_vmem [thread:$0]  (!%p3575_p5), %s729_s21, 2048, %s731_s7, [#allocation23], %s3400_s17, %s3400_s17, %s3401_s5  }
  0x4a   : > { %s3420_s0 = smov [#allocation25]   ;;  %s3682_s6 = sadd.s32 1, %s3396_s27  }
  0x4b   : > { %s745_s22 = sshll.u32 %s3420_s0, 4  ;;  %s47_s30 = ssub.s32 %s3396_s27, %s3682_s6  ;;  %s746_s22 = int_to_ptr.vmem [resolvable:$true] %s745_s22 }
  0x4c   : > { %s50_s10 = sadd.s32 1, %s3392_s26  ;;  %p48_p6 = scmp.eq.s32.totalorder %s47_s30, 0 }
  0x4d   : > { %p57_p7 = scmp.ne.s32.totalorder %s3392_s26, %s3388_s25  ;;  %p58_p8 = scmp.eq.s32.totalorder %s3396_s27, 0 }
  0x4e   : > { %s743_s19 = sshll.u32 %s3992_s3, 4  ;;  %p63_p9 = scmp.ne.s32.totalorder %s3388_s25, %s3384_s2  ;;  %s744_s19 = int_to_ptr.hbm [resolvable:$true] %s743_s19 }
  0x4f   : > { %2694 = dma.hbm_to_vmem [thread:$0]  (!%p3575_p5), %s744_s19, 16, %s746_s22, [#allocation26]  }
  0x50   : > { %s3693_s1 = scalar_select %p48_p6, %s3392_s26, %s50_s10  }
  0x51   : > { %p59_p10 = por %p58_p8, %p57_p7  ;;  %p3697_p11 = por %p64_p1, %p63_p9 }
  0x52   : > { %p2714_p12 = scmp.lt.s32.totalorder %s3396_s27, 2  ;;  %s756_s28 = sand.u32 1, %s3392_s26  }
  0x53   : > { %s2584_s5 = smul.u32 24, %s756_s28  ;;  %s3996_s7 = sld [smem:[#allocation38_spill]] }
  0x54   : > { %s2585_s21 = smul.u32 24, %s3396_s27  ;;  %p3704_p13 = pnand %p2714_p12, %p59_p10 }
  0x55   : > { %s760_s23 = scalar_lea.vmem [#allocation2], %s2584_s5  ;;  %s757_s19 = scalar_lea.sflag [#allocation3], %s756_s28 }
  0x56   : > { %s769_s20 = sshll.u32 %s760_s23, 4  ;;  %p3304_p2 = pneg %p3704_p13  ;;  %s770_s20 = int_to_ptr.vmem [resolvable:$true] %s769_s20 }
  0x59   : > { %s765_s2 = scalar_lea.hbm %s3996_s7, %s2585_s21  ;;  %s3307_s30 = scalar_lea.hbm %s3996_s7, 48 }
  0x5a   : > { %s767_s3 = sshll.u32 %s765_s2, 4  ;;  %s768_s3 = int_to_ptr.hbm [resolvable:$true] %s767_s3 }
  0x5b   : > { %s3300_s8 = sshra.s32 %s768_s3, 4  ;;  %s3301_s8 = int_to_ptr.hbm [resolvable:$true] %s3300_s8 }
  0x5c   : > { %s3302_s0 = scalar_lea.hbm %s3301_s8, 24  ;;  %p3308_p6 = scmp.lt.s32.totalorder %s3301_s8, %s3996_s7 }
  0x5d   : > { %p3303_p0 = scmp.ne.s32.totalorder %s3301_s8, %s3302_s0  ;;  %p3309_p7 = scmp.lt.s32.totalorder %s3307_s30, %s3302_s0 }
  0x5f   : > { %p3305_p4 = pnand %p3304_p2, %p3303_p0  ;;  %p3310_p8 = por %p3309_p7, %p3308_p6 }
  0x61   : > { %p3306_p5 = pneg %p3305_p4 }
  0x63   : > { %p3311_p9 = pnand %p3310_p8, %p3306_p5 }
  0x65   : > { %3314 = shalt.err (!%p3311_p9)
}
  0x66   : > { %2698 = dma.hbm_to_vmem [thread:$0]  (!%p3704_p13), %s768_s3, 384, %s770_s20, %s757_s19  }
  0x67   : > { %778 = sbr.rel (%p3564_p3) target bundleno = 5141 (0x1415), region = 100  ;;  %s780_s5 = sand.u32 (!%p3564_p3), 1, %s3388_s25  }
  0x68   : > { %s3724_s29 = smul.u32 (!%p3564_p3), 24, %s780_s5  ;;  %s781_s24 = scalar_lea.sflag (!%p3564_p3), [#allocation3], %s780_s5 }
  0x6a   : > { %s784_s2 = scalar_lea.vmem (!%p3564_p3), [#allocation2], %s3724_s29 }
  0x6c   : > { %3347 = dma.done.wait (%p3697_p11), %s781_s24, 384  }
  0x6d   : > { %3349 = vsyncadd (%p3697_p11), %s781_s24, 4294966912  ;;  %s3998_s23 = sld [smem:[#allocation36_spill]] }
  0x6e   : > { %3351 = dma.done.wait (%p64_p1), [#allocation5], 4112  }
  0x6f   : > { %3353 = vsyncadd (%p64_p1), [#allocation5], 4294963184 }
  0x70   : > { %3355 = dma.done.wait (%p64_p1), [#allocation8], 12384  }
  0x71   : > { %3357 = vsyncadd (%p64_p1), [#allocation8], 4294954912 }
  0x72   : > { %3359 = dma.done.wait (%p64_p1), [#allocation11], 4128  }
  0x73   : > { %3361 = vsyncadd (%p64_p1), [#allocation11], 4294963168 }
  0x74   : > { %3363 = dma.done.wait (%p64_p1), [#allocation14], 4128  }
  0x75   : > { %3365 = vsyncadd (%p64_p1), [#allocation14], 4294963168 }
  0x76   : > { %3367 = dma.done.wait (%p64_p1), [#allocation17], 4128  }
  0x77   : > { %3369 = vsyncadd (%p64_p1), [#allocation17], 4294963168 }
  0x78   : > { %3371 = dma.done.wait (%p64_p1), [#allocation20], 64  }
  0x79   : > { %3373 = vsyncadd (%p64_p1), [#allocation20], 4294967232 }
  0x7a   : > { %3375 = dma.done.wait (%p64_p1), [#allocation23], 4096  }
  0x7b   : > { %3377 = vsyncadd (%p64_p1), [#allocation23], 4294963200 }
  0x7c   : > { %3379 = dma.done.wait (%p64_p1), [#allocation26], 16  }
  0x7d   : > { %3381 = vsyncadd (%p64_p1), [#allocation26], 4294967280  ;;  %v947_v0 = vld [vmem:[#allocation4 + $0x78] sm:$0xff]  ;;  %v946_v1 = vld [vmem:[#allocation4 + $0x70] sm:$0xff]  ;;  %s3999_s20 = sld [smem:[#allocation41_spill]]  ;;  %vm1127_vm0 = vcmask 261120  }
  0x7e   : > { %v963_v2 = vld [vmem:[#allocation4 + $0xf8] sm:$0xff]  ;;  %968 = vmatpush.msra.mxu0 %v947_v0  ;;  %v962_v3 = vld [vmem:[#allocation4 + $0xf0] sm:$0xff]  ;;  %v945_v4 = vld [vmem:[#allocation4 + $0x68] sm:$0xff]  ;;  %s3421_s3 = smov 96   ;;  %s3422_s19 = smov 64   ;;  %vm1155_vm1 = vcmask 64512  }
  0x7f   : > { %988 = vmatpush.msra.mxu1 %v963_v2  ;;  %v961_v5 = vld [vmem:[#allocation4 + $0xe8] sm:$0xff]  ;;  %v944_v6 = vld [vmem:[#allocation4 + $0x60] sm:$0xff]  ;;  %v943_v8 = vld [vmem:[#allocation4 + $0x58] sm:$0xff]  ;;  %s3423_s8 = smov 32   ;;  %vm1402_vm2 = vcmask 523264   ;;  %vm1404_vm3 = vcmask 785408  }
  0x80   : > { %969 = vmatpush.msra.mxu0 %v946_v1  ;;  %v960_v7 = vld [vmem:[#allocation4 + $0xe0] sm:$0xff]  ;;  %v959_v9 = vld [vmem:[#allocation4 + $0xd8] sm:$0xff]  ;;  %v942_v10 = vld [vmem:[#allocation4 + $0x50] sm:$0xff]  ;;  %s4000_s22 = sld [smem:[#allocation45_spill]]  ;;  %p922_p1 = scmp.lt.s32.totalorder %s3998_s23, 1 }
  0x81   : > { %989 = vmatpush.msra.mxu1 %v962_v3  ;;  %v958_v11 = vld [vmem:[#allocation4 + $0xd0] sm:$0xff]  ;;  %v941_v12 = vld [vmem:[#allocation4 + $0x48] sm:$0xff]  ;;  %v940_v14 = vld [vmem:[#allocation4 + $0x40] sm:$0xff]  ;;  %s4001_s21 = sld [smem:[#allocation46_spill]] }
  0x82   : > { %970 = vmatpush.msra.mxu0 %v945_v4  ;;  %v957_v13 = vld [vmem:[#allocation4 + $0xc8] sm:$0xff]  ;;  %v1057_v16 = vld [vmem:[#allocation7 + $0x170] sm:$0xff]  ;;  %v956_v17 = vld [vmem:[#allocation4 + $0xc0] sm:$0xff]  ;;  %s4010_s23 = smov (!%p922_p1, %s3998_s23), 1  ;;  %s4003_s0 = sld [smem:[#allocation48_spill]] }
  0x83   : > { %990 = vmatpush.msra.mxu1 %v961_v5  ;;  %v1056_v15 = vld [vmem:[#allocation7 + $0x168] sm:$0xff]  ;;  %1087 = vmatpush.msra.mxu3 %v1057_v16  ;;  %v1053_v18 = vld [vmem:[#allocation7 + $0x150] sm:$0xff]  ;;  %v1054_v19 = vld [vmem:[#allocation7 + $0x158] sm:$0xff]  ;;  %s4004_s10 = sld [smem:[#allocation51_spill]] }
  0x84   : > { %971 = vmatpush.msra.mxu0 %v944_v6  ;;  %1067 = vmatpush.msra.mxu2 %v1056_v15  ;;  %v1050_v20 = vld [vmem:[#allocation7 + $0x138] sm:$0xff]  ;;  %v1051_v21 = vld [vmem:[#allocation7 + $0x140] sm:$0xff]  ;;  %v1048_v25 = vld [vmem:[#allocation7 + $0x128] sm:$0xff] }
  0x85   : > { %991 = vmatpush.msra.mxu1 %v960_v7  ;;  %v939_v22 = vld [vmem:[#allocation4 + $0x38] sm:$0xff]  ;;  %1088 = vmatpush.msra.mxu3 %v1054_v19  ;;  %v1047_v24 = vld [vmem:[#allocation7 + $0x120] sm:$0xff]  ;;  %v938_v26 = vld [vmem:[#allocation4 + $0x30] sm:$0xff] }
  0x86   : > { %972 = vmatpush.msra.mxu0 %v943_v8  ;;  %v955_v23 = vld [vmem:[#allocation4 + $0xb8] sm:$0xff]  ;;  %1068 = vmatpush.msra.mxu2 %v1053_v18  ;;  %v954_v27 = vld [vmem:[#allocation4 + $0xb0] sm:$0xff]  ;;  %v937_v30 = vld [vmem:[#allocation4 + $0x28] sm:$0xff] }
  0x87   : > { %992 = vmatpush.msra.mxu1 %v959_v9  ;;  %1089 = vmatpush.msra.mxu3 %v1051_v21  ;;  %v1044_v28 = vld [vmem:[#allocation7 + $0x108] sm:$0xff]  ;;  %v1045_v29 = vld [vmem:[#allocation7 + $0x110] sm:$0xff]  ;;  %v1042_v33 = vld [vmem:[#allocation7 + $0xf8] sm:$0xff] }
  0x88   : > { %973 = vmatpush.msra.mxu0 %v942_v10  ;;  %1069 = vmatpush.msra.mxu2 %v1050_v20  ;;  %v953_v31 = vld [vmem:[#allocation4 + $0xa8] sm:$0xff]  ;;  %v1041_v32 = vld [vmem:[#allocation7 + $0xf0] sm:$0xff]  ;;  %v936_v34 = vld [vmem:[#allocation4 + $0x20] sm:$0xff] }
  0x89   : > { %993 = vmatpush.msra.mxu1 %v958_v11  ;;  %1090 = vmatpush.msra.mxu3 %v1048_v25  ;;  %v935_v35 = vld [vmem:[#allocation4 + $0x18] sm:$0xff]  ;;  %v952_v36 = vld [vmem:[#allocation4 + $0xa0] sm:$0xff]  ;;  %v934_v40 = vld [vmem:[#allocation4 + $0x10] sm:$0xff] }
  0x8a   : > { %974 = vmatpush.msra.mxu0 %v941_v12  ;;  %1070 = vmatpush.msra.mxu2 %v1047_v24  ;;  %v951_v37 = vld [vmem:[#allocation4 + $0x98] sm:$0xff]  ;;  %v1039_v39 = vld [vmem:[#allocation7 + $0xe0] sm:$0xff]  ;;  %v950_v41 = vld [vmem:[#allocation4 + $0x90] sm:$0xff] }
  0x8b   : > { %994 = vmatpush.msra.mxu1 %v957_v13  ;;  %1091 = vmatpush.msra.mxu3 %v1045_v29  ;;  %v1038_v38 = vld [vmem:[#allocation7 + $0xd8] sm:$0xff]  ;;  %v1035_v42 = vld [vmem:[#allocation7 + $0xc0] sm:$0xff]  ;;  %v1036_v43 = vld [vmem:[#allocation7 + $0xc8] sm:$0xff] }
  0x8c   : > { %975 = vmatpush.msra.mxu0 %v940_v14  ;;  %1071 = vmatpush.msra.mxu2 %v1044_v28  ;;  %v1032_v44 = vld [vmem:[#allocation7 + $0xa8] sm:$0xff]  ;;  %v1033_v45 = vld [vmem:[#allocation7 + $0xb0] sm:$0xff]  ;;  %v1030_v49 = vld [vmem:[#allocation7 + $0x98] sm:$0xff] }
  0x8d   : > { %995 = vmatpush.msra.mxu1 %v956_v17  ;;  %1092 = vmatpush.msra.mxu3 %v1042_v33  ;;  %v933_v46 = vld [vmem:[#allocation4 + $0x8] sm:$0xff]  ;;  %v1029_v48 = vld [vmem:[#allocation7 + $0x90] sm:$0xff]  ;;  %v932_v50 = vld [vmem:[#allocation4] sm:$0xff] }
  0x8e   : > { %976 = vmatpush.msra.mxu0 %v939_v22  ;;  %1072 = vmatpush.msra.mxu2 %v1041_v32  ;;  %v949_v47 = vld [vmem:[#allocation4 + $0x88] sm:$0xff]  ;;  %v948_v51 = vld [vmem:[#allocation4 + $0x80] sm:$0xff]  ;;  %v931_v53 = vld [vmem:[%s784_s2 + $0x8] sm:$0xff] }
  0x8f   : > { %996 = vmatpush.msra.mxu1 %v955_v23  ;;  %1093 = vmatpush.msra.mxu3 %v1039_v39  ;;  %v930_v52 = vld [vmem:[%s784_s2] sm:$0xff]  ;;  %v1058_v54 = vld [vmem:[#allocation7 + $0x178] sm:$0xff]  ;;  %s2554_s2 = sshll.u32 %s4010_s23, 3 }
  0x90   : > { %977 = vmatpush.msra.mxu0 %v938_v26  ;;  %1073 = vmatpush.msra.mxu2 %v1038_v38  ;;  %v1026_v55 = vld [vmem:[#allocation7 + $0x78] sm:$0xff]  ;;  %v1027_v56 = vld [vmem:[#allocation7 + $0x80] sm:$0xff]  ;;  %v1052_v58 = vld [vmem:[#allocation7 + $0x148] sm:$0xff]  ;;  %s929_s28 = scalar_lea.vmem %s4004_s10, %s2554_s2 }
  0x91   : > { %997 = vmatpush.msra.mxu1 %v954_v27  ;;  %1094 = vmatpush.msra.mxu3 %v1036_v43  ;;  %v1055_v57 = vld [vmem:[#allocation7 + $0x160] sm:$0xff]  ;;  %v1049_v59 = vld [vmem:[#allocation7 + $0x130] sm:$0xff]  ;;  %v1046_v60 = vld [vmem:[#allocation7 + $0x118] sm:$0xff] }
  0x92   : > { %978 = vmatpush.msra.mxu0 %v937_v30  ;;  %1074 = vmatpush.msra.mxu2 %v1035_v42  ;;  %v1043_v61 = vld [vmem:[#allocation7 + $0x100] sm:$0xff]  ;;  %v1040_v62 = vld [vmem:[#allocation7 + $0xe8] sm:$0xff]  ;;  %v1037_v63 = vld [vmem:[#allocation7 + $0xd0] sm:$0xff] }
  0x93   : > { %998 = vmatpush.msra.mxu1 %v953_v31  ;;  %1095 = vmatpush.msra.mxu3 %v1033_v45  ;;  %v1034_v0 = vld [vmem:[#allocation7 + $0xb8] sm:$0xff]  ;;  %v1031_v1 = vld [vmem:[#allocation7 + $0xa0] sm:$0xff]  ;;  %v1028_v2 = vld [vmem:[#allocation7 + $0x88] sm:$0xff] }
  0x94   : > { %979 = vmatpush.msra.mxu0 %v936_v34  ;;  %1075 = vmatpush.msra.mxu2 %v1032_v44  ;;  %v1023_v3 = vld [vmem:[#allocation7 + $0x60] sm:$0xff]  ;;  %v1024_v4 = vld [vmem:[#allocation7 + $0x68] sm:$0xff]  ;;  %v1025_v5 = vld [vmem:[#allocation7 + $0x70] sm:$0xff] }
  0x95   : > { %999 = vmatpush.msra.mxu1 %v952_v36  ;;  %1096 = vmatpush.msra.mxu3 %v1030_v49  ;;  %v1020_v6 = vld [vmem:[#allocation7 + $0x48] sm:$0xff]  ;;  %v1021_v7 = vld [vmem:[#allocation7 + $0x50] sm:$0xff]  ;;  %v1022_v8 = vld [vmem:[#allocation7 + $0x58] sm:$0xff] }
  0x96   : > { %980 = vmatpush.msra.mxu0 %v935_v35  ;;  %1076 = vmatpush.msra.mxu2 %v1029_v48  ;;  %v1017_v9 = vld [vmem:[#allocation7 + $0x30] sm:$0xff]  ;;  %v1018_v10 = vld [vmem:[#allocation7 + $0x38] sm:$0xff]  ;;  %v1019_v11 = vld [vmem:[#allocation7 + $0x40] sm:$0xff] }
  0x97   : > { %1000 = vmatpush.msra.mxu1 %v951_v37  ;;  %1097 = vmatpush.msra.mxu3 %v1027_v56  ;;  %v1014_v12 = vld [vmem:[#allocation7 + $0x18] sm:$0xff]  ;;  %v1015_v13 = vld [vmem:[#allocation7 + $0x20] sm:$0xff]  ;;  %v1016_v14 = vld [vmem:[#allocation7 + $0x28] sm:$0xff] }
  0x98   : > { %981 = vmatpush.msra.mxu0 %v934_v40  ;;  %1077 = vmatpush.msra.mxu2 %v1026_v55  ;;  %v1011_v15 = vld [vmem:[#allocation7] sm:$0xff]  ;;  %v1012_v16 = vld [vmem:[#allocation7 + $0x8] sm:$0xff]  ;;  %v1013_v17 = vld [vmem:[#allocation7 + $0x10] sm:$0xff] }
  0x99   : > { %1001 = vmatpush.msra.mxu1 %v950_v41  ;;  %1098 = vmatpush.msra.mxu3 %v1024_v4  ;;  %v2789_v18 = vld [vmem:[#allocation6] ss:$0 sm:$0xff]  ;;  %v1009_v23 = vld [vmem:[%s3999_s20] sm:$0xff]  ;;  %v1059_v26 = vld [vmem:[#allocation9] sm:$0x7]  ;;  %s4002_s20 = sld [smem:[#allocation50_spill]] }
  0x9a   : > { %982 = vmatpush.msra.mxu0 %v933_v46  ;;  %1078 = vmatpush.msra.mxu2 %v1023_v3  ;;  %v1063_v27 = vperm.slane %v1059_v26, 2  ;;  %v1062_v30 = vperm.slane %v1059_v26, 1  ;;  %v1061_v31 = vperm.slane %v1059_v26, 0 }
  0x9b   : > { %1002 = vmatpush.msra.mxu1 %v949_v47  ;;  %1099 = vmatpush.msra.mxu3 %v1021_v7 }
  0x9c   : > { %983 = vmatpush.msra.mxu0 %v932_v50  ;;  %1079 = vmatpush.msra.mxu2 %v1020_v6 }
  0x9d   : > { %1003 = vmatpush.msra.mxu1 %v948_v51  ;;  %984 = vmatmul.f32.vlgmr.msra.gmra.mxu0 %v930_v52 }
  0x9e   : > { %1004 = vmatmul.f32.vlgmr.msra.gmra.mxu1 %v931_v53  ;;  %1107 = vmatpush.msrb.mxu0 %v1058_v54 }
  0x9f   : > { %1080 = vmatpush.msra.mxu2 %v1017_v9  ;;  %1100 = vmatpush.msra.mxu3 %v1018_v10 }
  0xa0   : > { %1108 = vmatpush.msrb.mxu0 %v1055_v57 }
  0xa1   : > { %1081 = vmatpush.msra.mxu2 %v1014_v12  ;;  %1101 = vmatpush.msra.mxu3 %v1015_v13 }
  0xa2   : > { %1109 = vmatpush.msrb.mxu0 %v1052_v58 }
  0xa3   : > { %1082 = vmatpush.msra.mxu2 %v1011_v15  ;;  %1102 = vmatpush.msra.mxu3 %v1012_v16 }
  0xa4   : > { %1110 = vmatpush.msrb.mxu0 %v1049_v59 }
  0xa6   : > { %1111 = vmatpush.msrb.mxu0 %v1046_v60 }
  0xa8   : > { %1112 = vmatpush.msrb.mxu0 %v1043_v61 }
  0xaa   : > { %1113 = vmatpush.msrb.mxu0 %v1040_v62 }
  0xac   : > { %1114 = vmatpush.msrb.mxu0 %v1037_v63 }
  0xae   : > { %1115 = vmatpush.msrb.mxu0 %v1034_v0 }
  0xb0   : > { %1116 = vmatpush.msrb.mxu0 %v1031_v1 }
  0xb2   : > { %1117 = vmatpush.msrb.mxu0 %v1028_v2 }
  0xb4   : > { %1118 = vmatpush.msrb.mxu0 %v1025_v5 }
  0xb6   : > { %1119 = vmatpush.msrb.mxu0 %v1022_v8 }
  0xb8   : > { %1120 = vmatpush.msrb.mxu0 %v1019_v11 }
  0xba   : > { %1121 = vmatpush.msrb.mxu0 %v1016_v14 }
  0xbc   : > { %1122 = vmatpush.msrb.mxu0 %v1013_v17 }
 0x11a   : > { %v985_v19 = vpop.f32.mrf.mxu0 }
 0x11b   : > { %v1005_v20 = vpop.f32.mrf.mxu1  ;;  %v986_v21 = vadd.f32 %v2789_v18, %v985_v19 }
 0x11d   : > { %v1006_v22 = vadd.f32 %v1005_v20, %v986_v21 }
 0x11f   : > { %v1008_v24 = vmul.f32 11.313708, %v1006_v22 }
 0x121   : > { %v3770_v25 = vadd.f32 %v1009_v23, %v1008_v24 }
 0x123   : > { %1083 = vmatmul.f32.vlgmr.msra.gmra.mxu2 %v3770_v25  ;;  %1103 = vmatmul.f32.vlgmr.msra.gmra.mxu3 %v3770_v25 }
 0x124   : > { %1123 = vmatmul.f32.vlgmr.msrb.gmra.mxu0 %v3770_v25 }
 0x1a1   : > { %v1124_v28 = vpop.f32.mrf.mxu0 }
 0x1a2   : > { %v3775_v29 = vadd.f32 %v1124_v28, %v1063_v27  ;;  %v1421_v28 = vld [vmem:[#allocation10 + $0x78] sm:$0xff] }
 0x1a4   : > { %1185 = vmatpush.msrb.mxu2 %v3775_v29 }
 0x1a6   : > { %v1104_v32 = vpop.f32.mrf.mxu3  ;;  %v1084_v33 = vpop.f32.mrf.mxu2 }
 0x1a7   : > { %v1105_v34 = vadd.f32 %v1104_v32, %v1062_v30  ;;  %v1085_v35 = vadd.f32 %v1084_v33, %v1061_v31  ;;  %v1420_v30 = vld [vmem:[#allocation10 + $0x70] sm:$0xff]  ;;  %v1418_v31 = vld [vmem:[#allocation10 + $0x60] sm:$0xff]  ;;  %v1417_v32 = vld [vmem:[#allocation10 + $0x58] sm:$0xff] }
 0x1a8   : > { %v1416_v33 = vld [vmem:[#allocation10 + $0x50] sm:$0xff] }
 0x1a9   : > { %1192 = vrot.lane.b32.xlu0 %v1105_v34, %s3421_s3  ;;  %2556 = vmatpush.xpose.msk.msrb.mxu1 %vm1127_vm0, %v1105_v34 }
 0x1ac   : > { %2557 = vmatmul.msk.f32.vlgmr.msrb.gmra.mxu1 %vm1127_vm0, %v1085_v35 }
 0x1b1   : > { %1190 = vrot.lane.b32.xlu0 %v1085_v35, %s3421_s3 }
 0x1b9   : > { %1259 = vrot.lane.b32.xlu0 %v1105_v34, %s3422_s19 }
 0x1c1   : > { %1325 = vrot.lane.b32.xlu0 %v1105_v34, %s3423_s8  ;;  %v1415_v34 = vld [vmem:[#allocation10 + $0x48] sm:$0xff] }
 0x1c9   : > { %1323 = vrot.lane.b32.xlu0 %v1085_v35, %s3423_s8 }
 0x21b   : > { %v1193_v36 = vpop.permute.xlu0 %1192 }
 0x21c   : > { %2559 = vmatpush.xpose.msk.msrb.mxu3 %vm1127_vm0, %v1193_v36 }
 0x223   : > { %v1191_v37 = vpop.permute.xlu0 %1190 }
 0x224   : > { %2560 = vmatmul.msk.f32.vlgmr.msrb.gmra.mxu3 %vm1127_vm0, %v1191_v37  ;;  %v1414_v37 = vld [vmem:[#allocation10 + $0x40] sm:$0xff] }
 0x229   : > { %v1151_v38 = vpop.f32.mrf.mxu1 }
 0x22a   : > { %v1154_v39 = vmul.f32 0.17677669, %v1151_v38  ;;  %v1413_v38 = vld [vmem:[#allocation10 + $0x38] sm:$0xff] }
 0x22b   : > { %v1260_v40 = vpop.permute.xlu0 %1259 }
 0x22c   : > { %2562 = vmatpush.xpose.msk.msra.mxu2 %vm1127_vm0, %v1260_v40  ;;  %v1156_v41 = vsel %vm1155_vm1, %v1154_v39, -inf  ;;  %v1411_v40 = vld [vmem:[#allocation10 + $0x28] sm:$0xff] }
 0x22d   : > { %1157 = vmax.xlane.f32.xlu1 %v1156_v41  ;;  %v1410_v41 = vld [vmem:[#allocation10 + $0x20] sm:$0xff] }
 0x233   : > { %v1326_v59 = vpop.permute.xlu0 %1325 }
 0x23b   : > { %v1324_v0 = vpop.permute.xlu0 %1323 }
 0x2a0   : > { %v1158_v42 = vpop.xlane.xlu1 %1157 }
 0x2a1   : > { %v1159_v43 = vsub.f32 %v1154_v39, %v1158_v42  ;;  %v1412_v39 = vld [vmem:[#allocation10 + $0x30] sm:$0xff]  ;;  %v1409_v42 = vld [vmem:[#allocation10 + $0x18] sm:$0xff] }
 0x2a3   : > { %v1160_v44 = vmul.f32 1.442695, %v1159_v43  ;;  %v1408_v43 = vld [vmem:[#allocation10 + $0x10] sm:$0xff] }
 0x2a5   : > { %2806 = vpow2.f32 %v1160_v44  ;;  %v1407_v44 = vld [vmem:[#allocation10 + $0x8] sm:$0xff] }
 0x2a7   : > { %v1215_v45 = vpop.f32.mrf.mxu3 }
 0x2a8   : > { %v1218_v46 = vmul.f32 0.17677669, %v1215_v45  ;;  %v1406_v45 = vld [vmem:[#allocation10] sm:$0xff] }
 0x2aa   : > { %v1219_v47 = vsel %vm1155_vm1, %v1218_v46, -inf }
 0x2ab   : > { %v2807_v48 = vpop.eup %2806  ;;  %1220 = vmax.xlane.f32.xlu1 %v1219_v47 }
 0x2ac   : > { %v1162_v49 = vsel %vm1155_vm1, %v2807_v48, 0.0 }
 0x2ad   : > { %1163 = vadd.xlane.f32.xlu2 %v1162_v49 }
 0x2c4   : > { %1231 = vrot.lane.b32.xlu1 %v3775_v29, %s3421_s3 }
 0x31e   : > { %v1221_v50 = vpop.xlane.xlu1 %1220 }
 0x31f   : > { %v1222_v51 = vsub.f32 %v1218_v46, %v1221_v50 }
 0x320   : > { %v1164_v52 = vpop.xlane.xlu2 %1163 }
 0x321   : > { %v1223_v53 = vmul.f32 1.442695, %v1222_v51  ;;  %2808 = vrcp.f32 %v1164_v52  ;;  %v2790_v52 = vld [vmem:[%s4000_s22] ss:$0 sm:$0xff] }
 0x323   : > { %2810 = vpow2.f32 %v1223_v53 }
 0x327   : > { %v2809_v54 = vpop.eup %2808 }
 0x328   : > { %v1166_v55 = vmul.f32 %v2809_v54, %v2807_v48 }
 0x329   : > { %v2811_v56 = vpop.eup %2810 }
 0x32a   : > { %2558 = vmatmul.msk.f32.vlgmr.msrb.gmra.mxu2 %vm1155_vm1, %v1166_v55  ;;  %v1225_v57 = vsel %vm1155_vm1, %v2811_v56, 0.0 }
 0x32b   : > { %1226 = vadd.xlane.f32.xlu2 %v1225_v57  ;;  %v1499_v57 = vld [vmem:[#allocation13 + $0x78] sm:$0xff] }
 0x336   : > { %v1232_v58 = vpop.permute.xlu1 %1231 }
 0x337   : > { %1252 = vmatpush.msra.mxu1 %v1232_v58  ;;  %v1498_v58 = vld [vmem:[#allocation13 + $0x70] sm:$0xff] }
 0x339   : > { %2565 = vmatpush.xpose.msk.msrb.mxu1 %vm1127_vm0, %v1326_v59 }
 0x343   : > { %1257 = vrot.lane.b32.xlu2 %v1085_v35, %s3422_s19 }
 0x39e   : > { %v1227_v60 = vpop.xlane.xlu2 %1226 }
 0x39f   : > { %2812 = vrcp.f32 %v1227_v60 }
 0x3a5   : > { %v2813_v61 = vpop.eup %2812 }
 0x3a6   : > { %v1229_v62 = vmul.f32 %v2813_v61, %v2811_v56  ;;  %v1258_v63 = vpop.permute.xlu2 %1257  ;;  %v3424_v56 = vmov 128.0  }
 0x3a7   : > { %2563 = vmatmul.msk.f32.vlgmr.msra.gmra.mxu2 %vm1127_vm0, %v1258_v63 }
 0x3a8   : > { %2561 = vmatmul.msk.f32.vlgmr.msra.gmra.mxu1 %vm1155_vm1, %v1229_v62 }
 0x3a9   : > { %1504 = vmatpush.msra.mxu1 %v1499_v57 }
 0x3ab   : > { %1505 = vmatpush.msra.mxu1 %v1498_v58  ;;  %v1642_v58 = vld [vmem:[#allocation7 + $0x2e8] sm:$0xff] }
 0x3ac   : > { %1654 = vmatpush.msra.mxu0 %v1642_v58 }
 0x3ad   : > { %v3800_v1 = vpop.f32.mrf.mxu2 }
 0x3b0   : > { %2566 = vmatmul.msk.f32.vlgmr.msrb.gmra.mxu1 %vm1127_vm0, %v1324_v0 }
 0x425   : > { %v1254_v2 = vpop.f32.mrf.mxu1 }
 0x42a   : > { %v1282_v3 = vpop.f32.mrf.mxu2 }
 0x42b   : > { %v1285_v4 = vmul.f32 0.17677669, %v1282_v3 }
 0x42d   : > { %v1348_v5 = vpop.f32.mrf.mxu1  ;;  %v1286_v6 = vsel %vm1155_vm1, %v1285_v4, -inf }
 0x42e   : > { %v1351_v7 = vmul.f32 0.17677669, %v1348_v5  ;;  %1287 = vmax.xlane.f32.xlu0 %v1286_v6  ;;  %v1496_v5 = vld [vmem:[#allocation13 + $0x60] sm:$0xff]  ;;  %v1495_v6 = vld [vmem:[#allocation13 + $0x58] sm:$0xff] }
 0x430   : > { %v1352_v8 = vsel %vm1155_vm1, %v1351_v7, -inf }
 0x431   : > { %1353 = vmax.xlane.f32.xlu2 %v1352_v8  ;;  %v1493_v8 = vld [vmem:[#allocation13 + $0x48] sm:$0xff] }
 0x442   : > { %1297 = vrot.lane.b32.xlu0 %v3775_v29, %s3422_s19 }
 0x4a1   : > { %v1288_v9 = vpop.xlane.xlu0 %1287 }
 0x4a2   : > { %v1289_v10 = vsub.f32 %v1285_v4, %v1288_v9  ;;  %v1497_v4 = vld [vmem:[#allocation13 + $0x68] sm:$0xff]  ;;  %v1492_v9 = vld [vmem:[#allocation13 + $0x40] sm:$0xff] }
 0x4a3   : > { %1506 = vmatpush.msra.mxu1 %v1497_v4  ;;  %v1636_v4 = vld [vmem:[#allocation7 + $0x2b8] sm:$0xff] }
 0x4a4   : > { %v1290_v11 = vmul.f32 1.442695, %v1289_v10  ;;  %v1354_v12 = vpop.xlane.xlu2 %1353  ;;  %v1491_v10 = vld [vmem:[#allocation13 + $0x38] sm:$0xff] }
 0x4a5   : > { %v1355_v13 = vsub.f32 %v1351_v7, %v1354_v12  ;;  %1507 = vmatpush.msra.mxu1 %v1496_v5  ;;  %v1494_v7 = vld [vmem:[#allocation13 + $0x50] sm:$0xff]  ;;  %v1489_v12 = vld [vmem:[#allocation13 + $0x28] sm:$0xff]  ;;  %v1637_v5 = vld [vmem:[#allocation7 + $0x2c0] sm:$0xff] }
 0x4a6   : > { %2814 = vpow2.f32 %v1290_v11  ;;  %v1490_v11 = vld [vmem:[#allocation13 + $0x30] sm:$0xff] }
 0x4a7   : > { %v1356_v14 = vmul.f32 1.442695, %v1355_v13  ;;  %1508 = vmatpush.msra.mxu1 %v1495_v6  ;;  %v1488_v13 = vld [vmem:[#allocation13 + $0x20] sm:$0xff] }
 0x4a8   : > { %v1638_v6 = vld [vmem:[#allocation7 + $0x2c8] sm:$0xff] }
 0x4a9   : > { %2816 = vpow2.f32 %v1356_v14  ;;  %1509 = vmatpush.msra.mxu1 %v1494_v7  ;;  %v1487_v14 = vld [vmem:[#allocation13 + $0x18] sm:$0xff] }
 0x4aa   : > { %v1633_v7 = vld [vmem:[#allocation7 + $0x2a0] sm:$0xff] }
 0x4ab   : > { %1510 = vmatpush.msra.mxu1 %v1493_v8  ;;  %v1634_v8 = vld [vmem:[#allocation7 + $0x2a8] sm:$0xff] }
 0x4ac   : > { %v2815_v15 = vpop.eup %2814 }
 0x4ad   : > { %v1292_v16 = vsel %vm1155_vm1, %v2815_v15, 0.0  ;;  %1511 = vmatpush.msra.mxu1 %v1492_v9  ;;  %v1635_v9 = vld [vmem:[#allocation7 + $0x2b0] sm:$0xff] }
 0x4ae   : > { %1293 = vadd.xlane.f32.xlu1 %v1292_v16  ;;  %v1485_v16 = vld [vmem:[#allocation13 + $0x8] sm:$0xff] }
 0x4af   : > { %v2817_v17 = vpop.eup %2816  ;;  %1512 = vmatpush.msra.mxu1 %v1491_v10  ;;  %v1630_v10 = vld [vmem:[#allocation7 + $0x288] sm:$0xff] }
 0x4b0   : > { %v1358_v18 = vsel %vm1155_vm1, %v2817_v17, 0.0 }
 0x4b1   : > { %1359 = vadd.xlane.f32.xlu2 %v1358_v18  ;;  %1513 = vmatpush.msra.mxu1 %v1490_v11  ;;  %v1540_v18 = vld [vmem:[#allocation16 + $0x78] sm:$0xff]  ;;  %v1631_v11 = vld [vmem:[#allocation7 + $0x290] sm:$0xff] }
 0x4b3   : > { %1514 = vmatpush.msra.mxu1 %v1489_v12  ;;  %v1632_v12 = vld [vmem:[#allocation7 + $0x298] sm:$0xff] }
 0x4b4   : > { %v1298_v19 = vpop.permute.xlu0 %1297 }
 0x4b5   : > { %1318 = vmatpush.msra.mxu3 %v1298_v19  ;;  %1515 = vmatpush.msra.mxu1 %v1488_v13  ;;  %v1539_v19 = vld [vmem:[#allocation16 + $0x70] sm:$0xff]  ;;  %v1627_v13 = vld [vmem:[#allocation7 + $0x270] sm:$0xff] }
 0x4b7   : > { %1426 = vmatpush.msrb.mxu3 %v1421_v28  ;;  %1516 = vmatpush.msra.mxu1 %v1487_v14  ;;  %v1534_v28 = vld [vmem:[#allocation16 + $0x48] sm:$0xff] }
 0x4b8   : > { %v1628_v14 = vld [vmem:[#allocation7 + $0x278] sm:$0xff] }
 0x4b9   : > { %1427 = vmatpush.msrb.mxu3 %v1420_v30  ;;  %v1533_v30 = vld [vmem:[#allocation16 + $0x40] sm:$0xff] }
 0x4c7   : > { %1363 = vrot.lane.b32.xlu1 %v3775_v29, %s3423_s8  ;;  %v1419_v29 = vld [vmem:[#allocation10 + $0x68] sm:$0xff] }
 0x4c8   : > { %1428 = vmatpush.msrb.mxu3 %v1419_v29 }
 0x4c9   : > { %1390 = vrot.lane.b32.xlu2 %v1254_v2, %s3423_s8 }
 0x4ca   : > { %1429 = vmatpush.msrb.mxu3 %v1418_v31  ;;  %v1532_v31 = vld [vmem:[#allocation16 + $0x38] sm:$0xff] }
 0x4cc   : > { %1430 = vmatpush.msrb.mxu3 %v1417_v32 }
 0x4ce   : > { %1431 = vmatpush.msrb.mxu3 %v1416_v33  ;;  %v1531_v33 = vld [vmem:[#allocation16 + $0x30] sm:$0xff] }
 0x4d0   : > { %1432 = vmatpush.msrb.mxu3 %v1415_v34 }
 0x4d2   : > { %1433 = vmatpush.msrb.mxu3 %v1414_v37  ;;  %v1529_v37 = vld [vmem:[#allocation16 + $0x20] sm:$0xff] }
 0x4d4   : > { %1434 = vmatpush.msrb.mxu3 %v1413_v38 }
 0x4d6   : > { %1435 = vmatpush.msrb.mxu3 %v1412_v39  ;;  %v1528_v39 = vld [vmem:[#allocation16 + $0x18] sm:$0xff] }
 0x4d8   : > { %1436 = vmatpush.msrb.mxu3 %v1411_v40 }
 0x4da   : > { %1437 = vmatpush.msrb.mxu3 %v1410_v41  ;;  %v2791_v41 = vld [vmem:[%s4001_s21] ss:$0 sm:$0xff] }
 0x4dc   : > { %1438 = vmatpush.msrb.mxu3 %v1409_v42 }
 0x4de   : > { %1439 = vmatpush.msrb.mxu3 %v1408_v43 }
 0x4e0   : > { %1440 = vmatpush.msrb.mxu3 %v1407_v44  ;;  %v2792_v44 = vld [vmem:[#allocation12] ss:$0 sm:$0xff] }
 0x4e2   : > { %1441 = vmatpush.msrb.mxu3 %v1406_v45 }
 0x521   : > { %v1294_v20 = vpop.xlane.xlu1 %1293 }
 0x522   : > { %2818 = vrcp.f32 %v1294_v20  ;;  %v1538_v20 = vld [vmem:[#allocation16 + $0x68] sm:$0xff] }
 0x524   : > { %v1360_v23 = vpop.xlane.xlu2 %1359 }
 0x525   : > { %2820 = vrcp.f32 %v1360_v23  ;;  %v1537_v23 = vld [vmem:[#allocation16 + $0x60] sm:$0xff] }
 0x526   : > { %2822 = vrcp.f32 %v3424_v56 }
 0x528   : > { %v2819_v21 = vpop.eup %2818 }
 0x529   : > { %v1296_v22 = vmul.f32 %v2819_v21, %v2815_v15  ;;  %v1486_v15 = vld [vmem:[#allocation13 + $0x10] sm:$0xff] }
 0x52a   : > { %1517 = vmatpush.msra.mxu1 %v1486_v15  ;;  %v1629_v15 = vld [vmem:[#allocation7 + $0x280] sm:$0xff] }
 0x52b   : > { %2564 = vmatmul.msk.f32.vlgmr.msra.gmra.mxu3 %vm1155_vm1, %v1296_v22  ;;  %v2821_v24 = vpop.eup %2820 }
 0x52c   : > { %v1362_v26 = vmul.f32 %v2821_v24, %v2817_v17  ;;  %v1391_v46 = vpop.permute.xlu2 %1390  ;;  %v2823_v59 = vpop.eup %2822  ;;  %v1484_v17 = vld [vmem:[#allocation13] sm:$0xff]  ;;  %1518 = vmatpush.msra.mxu1 %v1485_v16  ;;  %v1624_v16 = vld [vmem:[#allocation7 + $0x258] sm:$0xff] }
 0x52d   : > { %v1401_v48 = vsel %vm1127_vm0, %v3800_v1, %v1391_v46  ;;  %v1452_v60 = vmul.f32 128.0, %v2823_v59  ;;  %vm1456_vm4 = vweird.f32 %v2823_v59 }
 0x52e   : > { %1519 = vmatpush.msra.mxu1 %v1484_v17  ;;  %v1625_v17 = vld [vmem:[#allocation7 + $0x260] sm:$0xff] }
 0x52f   : > { %v1453_v61 = vsub.f32 1.0, %v1452_v60  ;;  %v1644_v60 = vld [vmem:[#allocation7 + $0x2f8] sm:$0xff] }
 0x530   : > { %1694 = vmatpush.msrb.mxu1 %v1644_v60 }
 0x531   : > { %v1454_v62 = vmul.f32 %v2823_v59, %v1453_v61  ;;  %v1639_v61 = vld [vmem:[#allocation7 + $0x2d0] sm:$0xff] }
 0x532   : > { %1655 = vmatpush.msra.mxu0 %v1639_v61 }
 0x533   : > { %v1455_v63 = vadd.f32 %v2823_v59, %v1454_v62  ;;  %v1640_v62 = vld [vmem:[#allocation7 + $0x2d8] sm:$0xff] }
 0x534   : > { %1656 = vmatpush.msra.mxu0 %v1636_v4 }
 0x535   : > { %v3823_v0 = vsel %vm1456_vm4, %v2823_v59, %v1455_v63  ;;  %v1643_v59 = vld [vmem:[#allocation7 + $0x2f0] sm:$0xff]  ;;  %v1641_v63 = vld [vmem:[#allocation7 + $0x2e0] sm:$0xff] }
 0x536   : > { %1674 = vmatpush.msra.mxu3 %v1643_v59  ;;  %1695 = vmatpush.msrb.mxu1 %v1641_v63  ;;  %v2796_v59 = vld [vmem:[#allocation21] ss:$0 sm:$0xff] }
 0x537   : > { %1657 = vmatpush.msra.mxu0 %v1633_v7 }
 0x538   : > { %1675 = vmatpush.msra.mxu3 %v1640_v62  ;;  %1696 = vmatpush.msrb.mxu1 %v1638_v6  ;;  %v1646_v62 = vld [vmem:[#allocation9 + $0x3] sm:$0x7] }
 0x539   : > { %v1364_v27 = vpop.permute.xlu1 %1363  ;;  %1658 = vmatpush.msra.mxu0 %v1630_v10  ;;  %v1648_v63 = vperm.slane %v1646_v62, 0 }
 0x53a   : > { %1384 = vmatpush.msrb.mxu2 %v1364_v27  ;;  %v1535_v27 = vld [vmem:[#allocation16 + $0x50] sm:$0xff]  ;;  %1676 = vmatpush.msra.mxu3 %v1637_v5 }
 0x53b   : > { %2567 = vmatmul.msk.f32.vlgmr.msrb.gmra.mxu2 %vm1155_vm1, %v1362_v26  ;;  %v1536_v26 = vld [vmem:[#allocation16 + $0x58] sm:$0xff]  ;;  %1697 = vmatpush.msrb.mxu1 %v1635_v9 }
 0x53c   : > { %1545 = vmatpush.msra.mxu2 %v1540_v18  ;;  %1677 = vmatpush.msra.mxu3 %v1634_v8  ;;  %v1626_v18 = vld [vmem:[#allocation7 + $0x268] sm:$0xff] }
 0x53d   : > { %1698 = vmatpush.msrb.mxu1 %v1632_v12  ;;  %1659 = vmatpush.msra.mxu0 %v1627_v13 }
 0x53e   : > { %1546 = vmatpush.msra.mxu2 %v1539_v19  ;;  %1678 = vmatpush.msra.mxu3 %v1631_v11  ;;  %v1621_v19 = vld [vmem:[#allocation7 + $0x240] sm:$0xff] }
 0x53f   : > { %1699 = vmatpush.msrb.mxu1 %v1629_v15  ;;  %1660 = vmatpush.msra.mxu0 %v1624_v16 }
 0x540   : > { %1547 = vmatpush.msra.mxu2 %v1538_v20  ;;  %1679 = vmatpush.msra.mxu3 %v1628_v14  ;;  %v1622_v20 = vld [vmem:[#allocation7 + $0x248] sm:$0xff] }
 0x541   : > { %1700 = vmatpush.msrb.mxu1 %v1626_v18  ;;  %1661 = vmatpush.msra.mxu0 %v1621_v19 }
 0x542   : > { %1548 = vmatpush.msra.mxu2 %v1537_v23  ;;  %1680 = vmatpush.msra.mxu3 %v1625_v17  ;;  %v1619_v23 = vld [vmem:[#allocation7 + $0x230] sm:$0xff] }
 0x544   : > { %1549 = vmatpush.msra.mxu2 %v1536_v26  ;;  %1681 = vmatpush.msra.mxu3 %v1622_v20  ;;  %v1615_v26 = vld [vmem:[#allocation7 + $0x210] sm:$0xff] }
 0x546   : > { %1550 = vmatpush.msra.mxu2 %v1535_v27  ;;  %1682 = vmatpush.msra.mxu3 %v1619_v23  ;;  %v1616_v27 = vld [vmem:[#allocation7 + $0x218] sm:$0xff] }
 0x548   : > { %1551 = vmatpush.msra.mxu2 %v1534_v28  ;;  %v1617_v28 = vld [vmem:[#allocation7 + $0x220] sm:$0xff]  ;;  %1683 = vmatpush.msra.mxu3 %v1616_v27 }
 0x54a   : > { %1552 = vmatpush.msra.mxu2 %v1533_v30  ;;  %v1612_v30 = vld [vmem:[#allocation7 + $0x1f8] sm:$0xff] }
 0x54c   : > { %1553 = vmatpush.msra.mxu2 %v1532_v31  ;;  %v1614_v31 = vld [vmem:[#allocation7 + $0x208] sm:$0xff] }
 0x54e   : > { %1554 = vmatpush.msra.mxu2 %v1531_v33  ;;  %v1610_v33 = vld [vmem:[#allocation7 + $0x1e8] sm:$0xff] }
 0x5ae   : > { %v1320_v35 = vpop.f32.mrf.mxu3 }
 0x5af   : > { %1394 = vrot.lane.b32.xlu0 %v1320_v35, %s3422_s19  ;;  %v1530_v35 = vld [vmem:[#allocation16 + $0x28] sm:$0xff] }
 0x5b0   : > { %1555 = vmatpush.msra.mxu2 %v1530_v35  ;;  %v1606_v35 = vld [vmem:[#allocation7 + $0x1c8] sm:$0xff] }
 0x5b2   : > { %1556 = vmatpush.msra.mxu2 %v1529_v37  ;;  %v1608_v37 = vld [vmem:[#allocation7 + $0x1d8] sm:$0xff] }
 0x5b4   : > { %1557 = vmatpush.msra.mxu2 %v1528_v39  ;;  %v1604_v39 = vld [vmem:[#allocation7 + $0x1b8] sm:$0xff] }
 0x5be   : > { %v1386_v36 = vpop.f32.mrf.mxu2 }
 0x5bf   : > { %1398 = vrot.lane.b32.xlu1 %v1386_v36, %s3421_s3 }
 0x621   : > { %v1395_v47 = vpop.permute.xlu0 %1394 }
 0x622   : > { %v1403_v49 = vsel %vm1402_vm2, %v1401_v48, %v1395_v47  ;;  %v1527_v47 = vld [vmem:[#allocation16 + $0x10] sm:$0xff]  ;;  %v1526_v48 = vld [vmem:[#allocation16 + $0x8] sm:$0xff] }
 0x623   : > { %1558 = vmatpush.msra.mxu2 %v1527_v47 }
 0x625   : > { %1559 = vmatpush.msra.mxu2 %v1526_v48 }
 0x631   : > { %v1399_v50 = vpop.permute.xlu1 %1398 }
 0x632   : > { %v1405_v51 = vsel %vm1404_vm3, %v1403_v49, %v1399_v50  ;;  %v1525_v49 = vld [vmem:[#allocation16] sm:$0xff]  ;;  %v2793_v50 = vld [vmem:[#allocation15] ss:$0 sm:$0xff] }
 0x633   : > { %1442 = vmatmul.f32.vlgmr.msrb.gmra.mxu3 %v1405_v51  ;;  %1560 = vmatpush.msra.mxu2 %v1525_v49 }
 0x6b6   : > { %v1443_v53 = vpop.f32.mrf.mxu3 }
 0x6b7   : > { %v1444_v54 = vadd.f32 %v2790_v52, %v1443_v53 }
 0x6b9   : > { %v1446_v55 = vadd.f32 %v1444_v54, %v3770_v25  ;;  %v2794_v54 = vld [vmem:[#allocation18] ss:$0 sm:$0xff] }
 0x6bb   : > { %1449 = vadd.xlane.f32.xlu0 %v1446_v55 }
 0x72e   : > { %v1450_v1 = vpop.xlane.xlu0 %1449 }
 0x72f   : > { %v1458_v2 = vmul.f32 %v3823_v0, %v1450_v1 }
 0x731   : > { %v3826_v3 = vsub.f32 %v1446_v55, %v1458_v2 }
 0x733   : > { %v1460_v25 = vmul.f32 %v3826_v3, %v3826_v3 }
 0x735   : > { %1461 = vadd.xlane.f32.xlu2 %v1460_v25 }
 0x7a8   : > { %v1462_v21 = vpop.xlane.xlu2 %1461 }
 0x7a9   : > { %v1463_v22 = vmul.f32 %v1462_v21, %v3823_v0  ;;  %v1623_v21 = vld [vmem:[#allocation7 + $0x250] sm:$0xff] }
 0x7aa   : > { %1701 = vmatpush.msrb.mxu1 %v1623_v21 }
 0x7ab   : > { %v1464_v24 = vadd.f32 1e-05, %v1463_v22  ;;  %v1618_v22 = vld [vmem:[#allocation7 + $0x228] sm:$0xff] }
 0x7ac   : > { %1662 = vmatpush.msra.mxu0 %v1618_v22 }
 0x7ad   : > { %2824 = vrsqrt.f32 %v1464_v24  ;;  %vm1471_vm6 = vweird.f32 %v1464_v24 }
 0x7ae   : > { %1663 = vmatpush.msra.mxu0 %v1615_v26 }
 0x7b0   : > { %1664 = vmatpush.msra.mxu0 %v1612_v30 }
 0x7b3   : > { %v2825_v29 = vpop.eup %2824 }
 0x7b4   : > { %v1466_v32 = vmul.f32 %v2825_v29, %v1464_v24  ;;  %vm1472_vm5 = vweird.f32 %v2825_v29  ;;  %v1620_v24 = vld [vmem:[#allocation7 + $0x238] sm:$0xff] }
 0x7b5   : > { %vm1473_vm7 = vmor %vm1471_vm6, %vm1472_vm5  ;;  %1702 = vmatpush.msrb.mxu1 %v1620_v24 }
 0x7b6   : > { %v1467_v34 = vmul.f32 %v2825_v29, %v1466_v32  ;;  %v1609_v32 = vld [vmem:[#allocation7 + $0x1e0] sm:$0xff] }
 0x7b7   : > { %1703 = vmatpush.msrb.mxu1 %v1617_v28  ;;  %1665 = vmatpush.msra.mxu0 %v1609_v32 }
 0x7b8   : > { %v1468_v36 = vmul.f32 0.5, %v1467_v34  ;;  %v1611_v34 = vld [vmem:[#allocation7 + $0x1f0] sm:$0xff] }
 0x7b9   : > { %1704 = vmatpush.msrb.mxu1 %v1614_v31  ;;  %1666 = vmatpush.msra.mxu0 %v1606_v35 }
 0x7ba   : > { %v1469_v38 = vsub.f32 1.5, %v1468_v36  ;;  %v1607_v36 = vld [vmem:[#allocation7 + $0x1d0] sm:$0xff] }
 0x7bb   : > { %1705 = vmatpush.msrb.mxu1 %v1611_v34 }
 0x7bc   : > { %v1470_v40 = vmul.f32 %v2825_v29, %v1469_v38  ;;  %v1603_v38 = vld [vmem:[#allocation7 + $0x1b0] sm:$0xff] }
 0x7bd   : > { %1706 = vmatpush.msrb.mxu1 %v1608_v37  ;;  %1667 = vmatpush.msra.mxu0 %v1603_v38 }
 0x7be   : > { %v1474_v42 = vsel %vm1473_vm7, %v2825_v29, %v1470_v40  ;;  %v1613_v29 = vld [vmem:[#allocation7 + $0x200] sm:$0xff] }
 0x7bf   : > { %v1475_v43 = vmul.f32 %v1474_v42, %v3826_v3  ;;  %1684 = vmatpush.msra.mxu3 %v1613_v29  ;;  %v1605_v40 = vld [vmem:[#allocation7 + $0x1c0] sm:$0xff] }
 0x7c0   : > { %v1601_v42 = vld [vmem:[#allocation7 + $0x1a0] sm:$0xff]  ;;  %1707 = vmatpush.msrb.mxu1 %v1605_v40 }
 0x7c1   : > { %v1479_v45 = vmul.f32 %v2791_v41, %v1475_v43  ;;  %1685 = vmatpush.msra.mxu3 %v1610_v33  ;;  %v1600_v41 = vld [vmem:[#allocation7 + $0x198] sm:$0xff]  ;;  %v1602_v43 = vld [vmem:[#allocation7 + $0x1a8] sm:$0xff] }
 0x7c2   : > { %1668 = vmatpush.msra.mxu0 %v1600_v41  ;;  %1708 = vmatpush.msrb.mxu1 %v1602_v43 }
 0x7c3   : > { %v1483_v46 = vadd.f32 %v2792_v44, %v1479_v45  ;;  %1686 = vmatpush.msra.mxu3 %v1607_v36  ;;  %v1597_v44 = vld [vmem:[#allocation7 + $0x180] sm:$0xff]  ;;  %v1598_v45 = vld [vmem:[#allocation7 + $0x188] sm:$0xff] }
 0x7c4   : > { %1669 = vmatpush.msra.mxu0 %v1597_v44 }
 0x7c5   : > { %1520 = vmatmul.f32.vlgmr.msra.gmra.mxu1 %v1483_v46  ;;  %1687 = vmatpush.msra.mxu3 %v1604_v39 }
 0x7c7   : > { %1688 = vmatpush.msra.mxu3 %v1601_v42 }
 0x7c9   : > { %1689 = vmatpush.msra.mxu3 %v1598_v45 }
 0x842   : > { %v1521_v51 = vpop.f32.mrf.mxu1 }
 0x843   : > { %v1522_v52 = vadd.f32 %v2793_v50, %v1521_v51 }
 0x845   : > { %v1524_v53 = vmax.f32 %v1522_v52, 0.0 }
 0x847   : > { %1561 = vmatmul.f32.vlgmr.msra.gmra.mxu2 %v1524_v53 }
 0x8ca   : > { %v1562_v55 = vpop.f32.mrf.mxu2 }
 0x8cb   : > { %v1563_v56 = vadd.f32 %v2794_v54, %v1562_v55 }
 0x8cd   : > { %v1565_v57 = vadd.f32 %v1563_v56, %v1483_v46  ;;  %v1599_v46 = vld [vmem:[#allocation7 + $0x190] sm:$0xff]  ;;  %v2795_v56 = vld [vmem:[#allocation19] ss:$0 sm:$0xff] }
 0x8ce   : > { %1709 = vmatpush.msrb.mxu1 %v1599_v46 }
 0x8cf   : > { %1568 = vadd.xlane.f32.xlu1 %v1565_v57 }
 0x942   : > { %v1569_v1 = vpop.xlane.xlu1 %1568 }
 0x943   : > { %v1570_v2 = vmul.f32 %v1569_v1, %v3823_v0  ;;  %v1650_v1 = vperm.slane %v1646_v62, 2 }
 0x945   : > { %v3836_v3 = vsub.f32 %v1565_v57, %v1570_v2 }
 0x947   : > { %v1572_v25 = vmul.f32 %v3836_v3, %v3836_v3 }
 0x949   : > { %1573 = vadd.xlane.f32.xlu0 %v1572_v25 }
 0x9bc   : > { %v1574_v47 = vpop.xlane.xlu0 %1573 }
 0x9bd   : > { %v1575_v48 = vmul.f32 %v1574_v47, %v3823_v0 }
 0x9bf   : > { %v1576_v49 = vadd.f32 1e-05, %v1575_v48 }
 0x9c1   : > { %2826 = vrsqrt.f32 %v1576_v49  ;;  %vm1583_vm9 = vweird.f32 %v1576_v49 }
 0x9c7   : > { %v2827_v50 = vpop.eup %2826 }
 0x9c8   : > { %v1578_v51 = vmul.f32 %v2827_v50, %v1576_v49  ;;  %vm1584_vm8 = vweird.f32 %v2827_v50 }
 0x9c9   : > { %vm1585_vm10 = vmor %vm1583_vm9, %vm1584_vm8 }
 0x9ca   : > { %v1579_v52 = vmul.f32 %v2827_v50, %v1578_v51 }
 0x9cc   : > { %v1580_v53 = vmul.f32 0.5, %v1579_v52 }
 0x9ce   : > { %v1581_v54 = vsub.f32 1.5, %v1580_v53 }
 0x9d0   : > { %v1582_v55 = vmul.f32 %v2827_v50, %v1581_v54 }
 0x9d2   : > { %v1586_v57 = vsel %vm1585_vm10, %v2827_v50, %v1582_v55 }
 0x9d3   : > { %v1587_v58 = vmul.f32 %v1586_v57, %v3836_v3  ;;  %v1649_v3 = vperm.slane %v1646_v62, 1 }
 0x9d5   : > { %v1591_v60 = vmul.f32 %v2795_v56, %v1587_v58 }
 0x9d7   : > { %v3842_v61 = vadd.f32 %v2796_v59, %v1591_v60 }
 0x9d9   : > { %1670 = vmatmul.f32.vlgmr.msra.gmra.mxu0 %v3842_v61  ;;  %1690 = vmatmul.f32.vlgmr.msra.gmra.mxu3 %v3842_v61 }
 0x9da   : > { %1710 = vmatmul.f32.vlgmr.msrb.gmra.mxu1 %v3842_v61 }
 0xa56   : > { %v1671_v2 = vpop.f32.mrf.mxu0 }
 0xa57   : > { %v1672_v25 = vadd.f32 %v1671_v2, %v1648_v63  ;;  %v1711_v4 = vpop.f32.mrf.mxu1  ;;  %v2004_v2 = vld [vmem:[#allocation10 + $0xf0] sm:$0xff] }
 0xa58   : > { %v3847_v5 = vadd.f32 %v1711_v4, %v1650_v1  ;;  %v2005_v1 = vld [vmem:[#allocation10 + $0xf8] sm:$0xff]  ;;  %v2002_v4 = vld [vmem:[#allocation10 + $0xe0] sm:$0xff] }
 0xa59   : > { %1775 = vrot.lane.b32.xlu1 %v1672_v25, %s3421_s3  ;;  %2011 = vmatpush.msrb.mxu0 %v2005_v1  ;;  %v2114_v1 = vld [vmem:[#allocation16 + $0xb0] sm:$0xff] }
 0xa5a   : > { %1770 = vmatpush.msra.mxu1 %v3847_v5 }
 0xa5b   : > { %2012 = vmatpush.msrb.mxu0 %v2004_v2 }
 0xa5c   : > { %v1691_v6 = vpop.f32.mrf.mxu3 }
 0xa5d   : > { %v1692_v7 = vadd.f32 %v1691_v6, %v1649_v3  ;;  %v2000_v3 = vld [vmem:[#allocation10 + $0xd0] sm:$0xff]  ;;  %v1999_v6 = vld [vmem:[#allocation10 + $0xc8] sm:$0xff] }
 0xa5f   : > { %1777 = vrot.lane.b32.xlu2 %v1692_v7, %s3421_s3  ;;  %2568 = vmatpush.xpose.msk.msrb.mxu2 %vm1127_vm0, %v1692_v7 }
 0xa61   : > { %1842 = vrot.lane.b32.xlu1 %v1672_v25, %s3422_s19 }
 0xa62   : > { %2569 = vmatmul.msk.f32.vlgmr.msrb.gmra.mxu2 %vm1127_vm0, %v1672_v25 }
 0xa67   : > { %1844 = vrot.lane.b32.xlu2 %v1692_v7, %s3422_s19 }
 0xa69   : > { %1908 = vrot.lane.b32.xlu1 %v1672_v25, %s3423_s8  ;;  %v2003_v25 = vld [vmem:[#allocation10 + $0xe8] sm:$0xff] }
 0xa6a   : > { %2013 = vmatpush.msrb.mxu0 %v2003_v25  ;;  %v2113_v25 = vld [vmem:[#allocation16 + $0xa8] sm:$0xff] }
 0xa6c   : > { %2014 = vmatpush.msrb.mxu0 %v2002_v4 }
 0xa6f   : > { %1910 = vrot.lane.b32.xlu2 %v1692_v7, %s3423_s8 }
 0xab9   : > { %v1778_v8 = vpop.permute.xlu2 %1777 }
 0xaba   : > { %2571 = vmatpush.xpose.msk.msra.mxu2 %vm1127_vm0, %v1778_v8 }
 0xac1   : > { %v1845_v27 = vpop.permute.xlu2 %1844 }
 0xac9   : > { %v1911_v31 = vpop.permute.xlu2 %1910 }
 0xacb   : > { %v1776_v9 = vpop.permute.xlu1 %1775 }
 0xacc   : > { %2572 = vmatmul.msk.f32.vlgmr.msra.gmra.mxu2 %vm1127_vm0, %v1776_v9  ;;  %v1998_v9 = vld [vmem:[#allocation10 + $0xc0] sm:$0xff] }
 0xad3   : > { %v1843_v16 = vpop.permute.xlu1 %1842 }
 0xadb   : > { %v1909_v17 = vpop.permute.xlu1 %1908 }
 0xae5   : > { %v1737_v10 = vpop.f32.mrf.mxu2 }
 0xae6   : > { %v1740_v11 = vmul.f32 0.17677669, %v1737_v10  ;;  %v1997_v10 = vld [vmem:[#allocation10 + $0xb8] sm:$0xff] }
 0xae8   : > { %v1741_v12 = vsel %vm1155_vm1, %v1740_v11, -inf }
 0xae9   : > { %1742 = vmax.xlane.f32.xlu1 %v1741_v12  ;;  %v1995_v12 = vld [vmem:[#allocation10 + $0xa8] sm:$0xff] }
 0xb02   : > { %1882 = vrot.lane.b32.xlu1 %v3847_v5, %s3422_s19 }
 0xb4f   : > { %v1800_v13 = vpop.f32.mrf.mxu2 }
 0xb50   : > { %v1803_v14 = vmul.f32 0.17677669, %v1800_v13  ;;  %v1994_v13 = vld [vmem:[#allocation10 + $0xa0] sm:$0xff] }
 0xb52   : > { %v1804_v15 = vsel %vm1155_vm1, %v1803_v14, -inf }
 0xb53   : > { %1805 = vmax.xlane.f32.xlu0 %v1804_v15  ;;  %v1992_v15 = vld [vmem:[#allocation10 + $0x90] sm:$0xff] }
 0xb5c   : > { %v1743_v18 = vpop.xlane.xlu1 %1742 }
 0xb5d   : > { %v1744_v45 = vsub.f32 %v1740_v11, %v1743_v18  ;;  %v1996_v11 = vld [vmem:[#allocation10 + $0xb0] sm:$0xff] }
 0xb5f   : > { %v1745_v48 = vmul.f32 1.442695, %v1744_v45  ;;  %v2068_v45 = vld [vmem:[#allocation13 + $0x98] sm:$0xff] }
 0xb74   : > { %v1883_v19 = vpop.permute.xlu1 %1882 }
 0xb75   : > { %1903 = vmatpush.msrb.mxu3 %v1883_v19 }
 0xbc6   : > { %v1806_v20 = vpop.xlane.xlu0 %1805 }
 0xbc7   : > { %v1807_v21 = vsub.f32 %v1803_v14, %v1806_v20  ;;  %v1993_v14 = vld [vmem:[#allocation10 + $0x98] sm:$0xff] }
 0xbc9   : > { %v1808_v22 = vmul.f32 1.442695, %v1807_v21 }
 0xbcb   : > { %2828 = vpow2.f32 %v1808_v22 }
 0xbd1   : > { %v2829_v23 = vpop.eup %2828 }
 0xbd2   : > { %v1810_v24 = vsel %vm1155_vm1, %v2829_v23, 0.0 }
 0xbd3   : > { %1811 = vadd.xlane.f32.xlu0 %v1810_v24 }
 0xbe7   : > { %1816 = vrot.lane.b32.xlu0 %v3847_v5, %s3421_s3 }
 0xc46   : > { %v1812_v26 = vpop.xlane.xlu0 %1811 }
 0xc47   : > { %2830 = vrcp.f32 %v1812_v26  ;;  %v2797_v26 = vld [vmem:[%s4000_s22 + $0x1] ss:$0 sm:$0xff] }
 0xc4d   : > { %v2831_v28 = vpop.eup %2830 }
 0xc4e   : > { %v1814_v30 = vmul.f32 %v2831_v28, %v2829_v23 }
 0xc59   : > { %v1817_v29 = vpop.permute.xlu0 %1816 }
 0xc5a   : > { %1837 = vmatpush.msrb.mxu2 %v1817_v29  ;;  %v2080_v29 = vld [vmem:[#allocation13 + $0xf8] sm:$0xff] }
 0xc5b   : > { %2573 = vmatmul.msk.f32.vlgmr.msrb.gmra.mxu2 %vm1155_vm1, %v1814_v30  ;;  %2086 = vmatpush.msrb.mxu1 %v2080_v29 }
 0xc5c   : > { %2574 = vmatpush.xpose.msk.msra.mxu2 %vm1127_vm0, %v1845_v27 }
 0xc60   : > { %2577 = vmatpush.xpose.msk.msrb.mxu2 %vm1127_vm0, %v1911_v31  ;;  %v2079_v31 = vld [vmem:[#allocation13 + $0xf0] sm:$0xff] }
 0xc61   : > { %2087 = vmatpush.msrb.mxu1 %v2079_v31 }
 0xc63   : > { %2575 = vmatmul.msk.f32.vlgmr.msra.gmra.mxu2 %vm1127_vm0, %v1843_v16  ;;  %v1991_v16 = vld [vmem:[#allocation10 + $0x88] sm:$0xff] }
 0xc6b   : > { %2578 = vmatmul.msk.f32.vlgmr.msrb.gmra.mxu2 %vm1127_vm0, %v1909_v17  ;;  %v1990_v17 = vld [vmem:[#allocation10 + $0x80] sm:$0xff] }
 0xcde   : > { %v1839_v32 = vpop.f32.mrf.mxu2 }
 0xce6   : > { %v1867_v33 = vpop.f32.mrf.mxu2 }
 0xce7   : > { %v1870_v34 = vmul.f32 0.17677669, %v1867_v33 }
 0xce9   : > { %v1871_v35 = vsel %vm1155_vm1, %v1870_v34, -inf }
 0xcea   : > { %1872 = vmax.xlane.f32.xlu2 %v1871_v35 }
 0xcee   : > { %v1933_v36 = vpop.f32.mrf.mxu2 }
 0xcef   : > { %v1936_v37 = vmul.f32 0.17677669, %v1933_v36  ;;  %v2078_v36 = vld [vmem:[#allocation13 + $0xe8] sm:$0xff] }
 0xcf0   : > { %2088 = vmatpush.msrb.mxu1 %v2078_v36  ;;  %v2192_v36 = vld [vmem:[#allocation22 + $0x48] sm:$0xff] }
 0xcf1   : > { %v1937_v38 = vsel %vm1155_vm1, %v1936_v37, -inf }
 0xcf2   : > { %1938 = vmax.xlane.f32.xlu0 %v1937_v38  ;;  %v2076_v38 = vld [vmem:[#allocation13 + $0xd8] sm:$0xff] }
 0xd5d   : > { %v1873_v39 = vpop.xlane.xlu2 %1872 }
 0xd5e   : > { %v1874_v40 = vsub.f32 %v1870_v34, %v1873_v39  ;;  %v2074_v39 = vld [vmem:[#allocation13 + $0xc8] sm:$0xff] }
 0xd60   : > { %v1875_v41 = vmul.f32 1.442695, %v1874_v40  ;;  %v2073_v40 = vld [vmem:[#allocation13 + $0xc0] sm:$0xff] }
 0xd62   : > { %2832 = vpow2.f32 %v1875_v41  ;;  %v2072_v41 = vld [vmem:[#allocation13 + $0xb8] sm:$0xff] }
 0xd65   : > { %v1939_v42 = vpop.xlane.xlu0 %1938 }
 0xd66   : > { %v1940_v43 = vsub.f32 %v1936_v37, %v1939_v42  ;;  %v2077_v37 = vld [vmem:[#allocation13 + $0xe0] sm:$0xff]  ;;  %v2071_v42 = vld [vmem:[#allocation13 + $0xb0] sm:$0xff] }
 0xd67   : > { %2089 = vmatpush.msrb.mxu1 %v2077_v37  ;;  %v2191_v37 = vld [vmem:[#allocation22 + $0x40] sm:$0xff] }
 0xd68   : > { %v2833_v44 = vpop.eup %2832  ;;  %v1941_v46 = vmul.f32 1.442695, %v1940_v43  ;;  %v2070_v43 = vld [vmem:[#allocation13 + $0xa8] sm:$0xff] }
 0xd69   : > { %v1877_v47 = vsel %vm1155_vm1, %v2833_v44, 0.0  ;;  %2090 = vmatpush.msrb.mxu1 %v2076_v38  ;;  %v2190_v38 = vld [vmem:[#allocation22 + $0x38] sm:$0xff] }
 0xd6a   : > { %2834 = vpow2.f32 %v1941_v46  ;;  %1878 = vadd.xlane.f32.xlu2 %v1877_v47  ;;  %v2067_v46 = vld [vmem:[#allocation13 + $0x90] sm:$0xff]  ;;  %v2066_v47 = vld [vmem:[#allocation13 + $0x88] sm:$0xff] }
 0xd6b   : > { %2836 = vpow2.f32 %v1745_v48  ;;  %v2065_v48 = vld [vmem:[#allocation13 + $0x80] sm:$0xff] }
 0xd70   : > { %v2835_v49 = vpop.eup %2834 }
 0xd71   : > { %v1943_v50 = vsel %vm1155_vm1, %v2835_v49, 0.0  ;;  %v2837_v51 = vpop.eup %2836 }
 0xd72   : > { %1944 = vadd.xlane.f32.xlu0 %v1943_v50  ;;  %v1747_v52 = vsel %vm1155_vm1, %v2837_v51, 0.0  ;;  %v2122_v50 = vld [vmem:[#allocation16 + $0xf0] sm:$0xff] }
 0xd7a   : > { %1748 = vadd.xlane.f32.xlu0 %v1747_v52 }
 0xd82   : > { %1948 = vrot.lane.b32.xlu2 %v3847_v5, %s3423_s8  ;;  %v2001_v5 = vld [vmem:[#allocation10 + $0xd8] sm:$0xff] }
 0xd83   : > { %2015 = vmatpush.msrb.mxu0 %v2001_v5  ;;  %v2112_v5 = vld [vmem:[#allocation16 + $0xa0] sm:$0xff] }
 0xd85   : > { %2016 = vmatpush.msrb.mxu0 %v2000_v3 }
 0xd87   : > { %2017 = vmatpush.msrb.mxu0 %v1999_v6  ;;  %v2111_v6 = vld [vmem:[#allocation16 + $0x98] sm:$0xff] }
 0xd89   : > { %2018 = vmatpush.msrb.mxu0 %v1998_v9 }
 0xd8b   : > { %2019 = vmatpush.msrb.mxu0 %v1997_v10 }
 0xd8d   : > { %2020 = vmatpush.msrb.mxu0 %v1996_v11  ;;  %v2799_v11 = vld [vmem:[#allocation12 + $0x1] ss:$0 sm:$0xff] }
 0xd8e   : > { %1975 = vrot.lane.b32.xlu0 %v1839_v32, %s3423_s8 }
 0xd8f   : > { %2021 = vmatpush.msrb.mxu0 %v1995_v12 }
 0xd91   : > { %2022 = vmatpush.msrb.mxu0 %v1994_v13 }
 0xd93   : > { %2023 = vmatpush.msrb.mxu0 %v1993_v14  ;;  %v2110_v14 = vld [vmem:[#allocation16 + $0x90] sm:$0xff] }
 0xd95   : > { %2024 = vmatpush.msrb.mxu0 %v1992_v15  ;;  %v2109_v15 = vld [vmem:[#allocation16 + $0x88] sm:$0xff] }
 0xd97   : > { %2025 = vmatpush.msrb.mxu0 %v1991_v16  ;;  %v2108_v16 = vld [vmem:[#allocation16 + $0x80] sm:$0xff] }
 0xd99   : > { %2026 = vmatpush.msrb.mxu0 %v1990_v17  ;;  %v2800_v17 = vld [vmem:[#allocation15 + $0x1] ss:$0 sm:$0xff] }
 0xddd   : > { %v1879_v53 = vpop.xlane.xlu2 %1878 }
 0xdde   : > { %2838 = vrcp.f32 %v1879_v53 }
 0xde4   : > { %v2839_v54 = vpop.eup %2838 }
 0xde5   : > { %v1881_v55 = vmul.f32 %v2839_v54, %v2833_v44  ;;  %v1945_v56 = vpop.xlane.xlu0 %1944  ;;  %v1949_v57 = vpop.permute.xlu2 %1948  ;;  %v2069_v44 = vld [vmem:[#allocation13 + $0xa0] sm:$0xff] }
 0xde6   : > { %2840 = vrcp.f32 %v1945_v56  ;;  %1969 = vmatpush.msra.mxu3 %v1949_v57  ;;  %v2120_v54 = vld [vmem:[#allocation16 + $0xe0] sm:$0xff]  ;;  %v2119_v56 = vld [vmem:[#allocation16 + $0xd8] sm:$0xff]  ;;  %v2118_v57 = vld [vmem:[#allocation16 + $0xd0] sm:$0xff] }
 0xde7   : > { %2576 = vmatmul.msk.f32.vlgmr.msrb.gmra.mxu3 %vm1155_vm1, %v1881_v55 }
 0xdec   : > { %v2841_v58 = vpop.eup %2840 }
 0xded   : > { %v1947_v59 = vmul.f32 %v2841_v58, %v2835_v49  ;;  %v1749_v60 = vpop.xlane.xlu0 %1748  ;;  %v2123_v49 = vld [vmem:[#allocation16 + $0xf8] sm:$0xff]  ;;  %v2117_v58 = vld [vmem:[#allocation16 + $0xc8] sm:$0xff] }
 0xdee   : > { %2842 = vrcp.f32 %v1749_v60  ;;  %2129 = vmatpush.msra.mxu2 %v2123_v49 }
 0xdef   : > { %2579 = vmatmul.msk.f32.vlgmr.msra.gmra.mxu3 %vm1155_vm1, %v1947_v59  ;;  %v2116_v59 = vld [vmem:[#allocation16 + $0xc0] sm:$0xff] }
 0xdf0   : > { %2130 = vmatpush.msra.mxu2 %v2122_v50  ;;  %v2236_v50 = vld [vmem:[#allocation24 + $0x60] sm:$0xff] }
 0xdf4   : > { %v2843_v62 = vpop.eup %2842 }
 0xdf5   : > { %v1751_v63 = vmul.f32 %v2843_v62, %v2837_v51  ;;  %v2121_v51 = vld [vmem:[#allocation16 + $0xe8] sm:$0xff]  ;;  %v2115_v62 = vld [vmem:[#allocation16 + $0xb8] sm:$0xff] }
 0xdf6   : > { %2131 = vmatpush.msra.mxu2 %v2121_v51 }
 0xdf7   : > { %2570 = vmatmul.msk.f32.vlgmr.msra.gmra.mxu1 %vm1155_vm1, %v1751_v63 }
 0xdf8   : > { %2132 = vmatpush.msra.mxu2 %v2120_v54  ;;  %v2233_v54 = vld [vmem:[#allocation24 + $0x48] sm:$0xff] }
 0xdfa   : > { %2133 = vmatpush.msra.mxu2 %v2119_v56 }
 0xdfc   : > { %2134 = vmatpush.msra.mxu2 %v2118_v57  ;;  %v2231_v57 = vld [vmem:[#allocation24 + $0x38] sm:$0xff] }
 0xdfe   : > { %2135 = vmatpush.msra.mxu2 %v2117_v58 }
 0xe00   : > { %v1976_v19 = vpop.permute.xlu0 %1975  ;;  %2136 = vmatpush.msra.mxu2 %v2116_v59  ;;  %v2230_v59 = vld [vmem:[#allocation24 + $0x30] sm:$0xff] }
 0xe02   : > { %2137 = vmatpush.msra.mxu2 %v2115_v62 }
 0xe04   : > { %2138 = vmatpush.msra.mxu2 %v2114_v1 }
 0xe06   : > { %2139 = vmatpush.msra.mxu2 %v2113_v25 }
 0xe08   : > { %2140 = vmatpush.msra.mxu2 %v2112_v5 }
 0xe0a   : > { %2141 = vmatpush.msra.mxu2 %v2111_v6  ;;  %v2803_v6 = vld [vmem:[#allocation21 + $0x1] ss:$0 sm:$0xff] }
 0xe0c   : > { %2142 = vmatpush.msra.mxu2 %v2110_v14 }
 0xe0e   : > { %2143 = vmatpush.msra.mxu2 %v2109_v15 }
 0xe10   : > { %2144 = vmatpush.msra.mxu2 %v2108_v16  ;;  %v2805_v16 = vld [vmem:[#allocation25] ss:$0 sm:$0xff] }
 0xe6a   : > { %v1905_v7 = vpop.f32.mrf.mxu3 }
 0xe6b   : > { %1979 = vrot.lane.b32.xlu1 %v1905_v7, %s3422_s19 }
 0xe72   : > { %v1971_v8 = vpop.f32.mrf.mxu3 }
 0xe73   : > { %1983 = vrot.lane.b32.xlu2 %v1971_v8, %s3421_s3  ;;  %v2798_v8 = vld [vmem:[%s4001_s21 + $0x1] ss:$0 sm:$0xff]  ;;  %s925_s3 = scalar_lea.vmem %s4002_s20, %s2554_s2 }
 0xe74   : > { %v1772_v18 = vpop.f32.mrf.mxu1 }
 0xe75   : > { %v1986_v20 = vsel %vm1127_vm0, %v1772_v18, %v1976_v19 }
 0xecd   : > { %v1984_v22 = vpop.permute.xlu2 %1983 }
 0xedd   : > { %v1980_v21 = vpop.permute.xlu1 %1979 }
 0xede   : > { %v1987_v23 = vsel %vm1402_vm2, %v1986_v20, %v1980_v21  ;;  %v2801_v21 = vld [vmem:[#allocation18 + $0x1] ss:$0 sm:$0xff] }
 0xedf   : > { %v1988_v24 = vsel %vm1404_vm3, %v1987_v23, %v1984_v22 }
 0xee0   : > { %2027 = vmatmul.f32.vlgmr.msrb.gmra.mxu0 %v1988_v24 }
 0xf5d   : > { %v2028_v27 = vpop.f32.mrf.mxu0 }
 0xf5e   : > { %v2029_v28 = vadd.f32 %v2797_v26, %v2028_v27  ;;  %v2198_v26 = vld [vmem:[#allocation22 + $0x78] sm:$0xff]  ;;  %v2197_v27 = vld [vmem:[#allocation22 + $0x70] sm:$0xff] }
 0xf5f   : > { %2203 = vmatpush.msrb.mxu3 %v2198_v26 }
 0xf60   : > { %v2031_v30 = vadd.f32 %v2029_v28, %v3842_v61  ;;  %v2075_v61 = vld [vmem:[#allocation13 + $0xd0] sm:$0xff] }
 0xf61   : > { %2091 = vmatpush.msrb.mxu1 %v2075_v61  ;;  %2204 = vmatpush.msrb.mxu3 %v2197_v27  ;;  %v2189_v61 = vld [vmem:[#allocation22 + $0x30] sm:$0xff] }
 0xf62   : > { %2036 = vadd.xlane.f32.xlu0 %v2031_v30 }
 0xf63   : > { %2092 = vmatpush.msrb.mxu1 %v2074_v39  ;;  %v2188_v39 = vld [vmem:[#allocation22 + $0x28] sm:$0xff] }
 0xf65   : > { %2093 = vmatpush.msrb.mxu1 %v2073_v40  ;;  %v2187_v40 = vld [vmem:[#allocation22 + $0x20] sm:$0xff] }
 0xf67   : > { %2094 = vmatpush.msrb.mxu1 %v2072_v41  ;;  %v2186_v41 = vld [vmem:[#allocation22 + $0x18] sm:$0xff] }
 0xf69   : > { %2095 = vmatpush.msrb.mxu1 %v2071_v42  ;;  %v2185_v42 = vld [vmem:[#allocation22 + $0x10] sm:$0xff] }
 0xf6b   : > { %2096 = vmatpush.msrb.mxu1 %v2070_v43  ;;  %v2184_v43 = vld [vmem:[#allocation22 + $0x8] sm:$0xff] }
 0xf6d   : > { %2097 = vmatpush.msrb.mxu1 %v2069_v44  ;;  %v2183_v44 = vld [vmem:[#allocation22] sm:$0xff] }
 0xf6f   : > { %2098 = vmatpush.msrb.mxu1 %v2068_v45  ;;  %v2239_v45 = vld [vmem:[#allocation24 + $0x78] sm:$0xff] }
 0xf70   : > { %2244 = vmatpush.msra.mxu0 %v2239_v45 }
 0xf71   : > { %2099 = vmatpush.msrb.mxu1 %v2067_v46  ;;  %v2238_v46 = vld [vmem:[#allocation24 + $0x70] sm:$0xff] }
 0xf72   : > { %2245 = vmatpush.msra.mxu0 %v2238_v46 }
 0xf73   : > { %2100 = vmatpush.msrb.mxu1 %v2066_v47  ;;  %v2237_v47 = vld [vmem:[#allocation24 + $0x68] sm:$0xff] }
 0xf74   : > { %2246 = vmatpush.msra.mxu0 %v2237_v47 }
 0xf75   : > { %2101 = vmatpush.msrb.mxu1 %v2065_v48 }
 0xf76   : > { %2247 = vmatpush.msra.mxu0 %v2236_v50 }
 0xfd5   : > { %v2037_v32 = vpop.xlane.xlu0 %2036 }
 0xfd6   : > { %v2038_v33 = vmul.f32 %v2037_v32, %v3823_v0  ;;  %v2196_v32 = vld [vmem:[#allocation22 + $0x68] sm:$0xff] }
 0xfd7   : > { %2205 = vmatpush.msrb.mxu3 %v2196_v32 }
 0xfd8   : > { %v3893_v34 = vsub.f32 %v2031_v30, %v2038_v33  ;;  %v2195_v33 = vld [vmem:[#allocation22 + $0x60] sm:$0xff] }
 0xfd9   : > { %2206 = vmatpush.msrb.mxu3 %v2195_v33 }
 0xfda   : > { %v2040_v35 = vmul.f32 %v3893_v34, %v3893_v34 }
 0xfdc   : > { %2041 = vadd.xlane.f32.xlu1 %v2040_v35  ;;  %v2193_v35 = vld [vmem:[#allocation22 + $0x50] sm:$0xff] }
0x104f   : > { %v2042_v52 = vpop.xlane.xlu1 %2041 }
0x1050   : > { %v2043_v53 = vmul.f32 %v2042_v52, %v3823_v0  ;;  %v2235_v52 = vld [vmem:[#allocation24 + $0x58] sm:$0xff] }
0x1051   : > { %2248 = vmatpush.msra.mxu0 %v2235_v52 }
0x1052   : > { %v2044_v55 = vadd.f32 1e-05, %v2043_v53  ;;  %v2234_v53 = vld [vmem:[#allocation24 + $0x50] sm:$0xff] }
0x1053   : > { %2249 = vmatpush.msra.mxu0 %v2234_v53 }
0x1054   : > { %2844 = vrsqrt.f32 %v2044_v55  ;;  %vm2051_vm12 = vweird.f32 %v2044_v55 }
0x1055   : > { %2250 = vmatpush.msra.mxu0 %v2233_v54 }
0x105a   : > { %v2845_v60 = vpop.eup %2844 }
0x105b   : > { %v2046_v63 = vmul.f32 %v2845_v60, %v2044_v55  ;;  %vm2052_vm11 = vweird.f32 %v2845_v60  ;;  %v2232_v55 = vld [vmem:[#allocation24 + $0x40] sm:$0xff] }
0x105c   : > { %vm2053_vm13 = vmor %vm2051_vm12, %vm2052_vm11  ;;  %2251 = vmatpush.msra.mxu0 %v2232_v55 }
0x105d   : > { %v2047_v2 = vmul.f32 %v2845_v60, %v2046_v63  ;;  %v2228_v63 = vld [vmem:[#allocation24 + $0x20] sm:$0xff] }
0x105e   : > { %2252 = vmatpush.msra.mxu0 %v2231_v57 }
0x105f   : > { %v2048_v4 = vmul.f32 0.5, %v2047_v2  ;;  %v2227_v2 = vld [vmem:[#allocation24 + $0x18] sm:$0xff] }
0x1060   : > { %2253 = vmatpush.msra.mxu0 %v2230_v59 }
0x1061   : > { %v2049_v3 = vsub.f32 1.5, %v2048_v4  ;;  %v2802_v4 = vld [vmem:[#allocation19 + $0x1] ss:$0 sm:$0xff] }
0x1063   : > { %v2050_v7 = vmul.f32 %v2845_v60, %v2049_v3 }
0x1065   : > { %v2054_v9 = vsel %vm2053_vm13, %v2845_v60, %v2050_v7  ;;  %v2229_v60 = vld [vmem:[#allocation24 + $0x28] sm:$0xff] }
0x1066   : > { %v2055_v10 = vmul.f32 %v2054_v9, %v3893_v34  ;;  %v2194_v34 = vld [vmem:[#allocation22 + $0x58] sm:$0xff]  ;;  %2254 = vmatpush.msra.mxu0 %v2229_v60  ;;  %v2226_v9 = vld [vmem:[#allocation24 + $0x10] sm:$0xff] }
0x1067   : > { %2207 = vmatpush.msrb.mxu3 %v2194_v34 }
0x1068   : > { %v2059_v12 = vmul.f32 %v2798_v8, %v2055_v10  ;;  %2255 = vmatpush.msra.mxu0 %v2228_v63  ;;  %v2225_v10 = vld [vmem:[#allocation24 + $0x8] sm:$0xff] }
0x1069   : > { %2208 = vmatpush.msrb.mxu3 %v2193_v35 }
0x106a   : > { %v2063_v13 = vadd.f32 %v2799_v11, %v2059_v12  ;;  %2256 = vmatpush.msra.mxu0 %v2227_v2  ;;  %v2224_v11 = vld [vmem:[#allocation24] sm:$0xff]  ;;  %v2804_v12 = vld [vmem:[%s4003_s0] ss:$0 sm:$0xff] }
0x106b   : > { %2209 = vmatpush.msrb.mxu3 %v2192_v36 }
0x106c   : > { %2102 = vmatmul.f32.vlgmr.msrb.gmra.mxu1 %v2063_v13  ;;  %2257 = vmatpush.msra.mxu0 %v2226_v9 }
0x106d   : > { %2210 = vmatpush.msrb.mxu3 %v2191_v37 }
0x106e   : > { %2258 = vmatpush.msra.mxu0 %v2225_v10 }
0x106f   : > { %2211 = vmatpush.msrb.mxu3 %v2190_v38 }
0x1070   : > { %2259 = vmatpush.msra.mxu0 %v2224_v11 }
0x1071   : > { %2212 = vmatpush.msrb.mxu3 %v2189_v61 }
0x1073   : > { %2213 = vmatpush.msrb.mxu3 %v2188_v39 }
0x1075   : > { %2214 = vmatpush.msrb.mxu3 %v2187_v40 }
0x1077   : > { %2215 = vmatpush.msrb.mxu3 %v2186_v41 }
0x1079   : > { %2216 = vmatpush.msrb.mxu3 %v2185_v42 }
0x107b   : > { %2217 = vmatpush.msrb.mxu3 %v2184_v43 }
0x107d   : > { %2218 = vmatpush.msrb.mxu3 %v2183_v44 }
0x10e9   : > { %v2103_v18 = vpop.f32.mrf.mxu1 }
0x10ea   : > { %v2104_v19 = vadd.f32 %v2800_v17, %v2103_v18 }
0x10ec   : > { %v2106_v20 = vmax.f32 %v2104_v19, 0.0 }
0x10ee   : > { %2145 = vmatmul.f32.vlgmr.msra.gmra.mxu2 %v2106_v20 }
0x1171   : > { %v2146_v22 = vpop.f32.mrf.mxu2 }
0x1172   : > { %v2147_v23 = vadd.f32 %v2801_v21, %v2146_v22 }
0x1174   : > { %v2149_v24 = vadd.f32 %v2147_v23, %v2063_v13 }
0x1176   : > { %2154 = vadd.xlane.f32.xlu2 %v2149_v24 }
0x11e9   : > { %v2155_v28 = vpop.xlane.xlu2 %2154 }
0x11ea   : > { %v2156_v30 = vmul.f32 %v2155_v28, %v3823_v0 }
0x11ec   : > { %v3903_v29 = vsub.f32 %v2149_v24, %v2156_v30 }
0x11ee   : > { %v2158_v31 = vmul.f32 %v3903_v29, %v3903_v29 }
0x11f0   : > { %2159 = vadd.xlane.f32.xlu0 %v2158_v31 }
0x1263   : > { %v2160_v48 = vpop.xlane.xlu0 %2159 }
0x1264   : > { %v2161_v49 = vmul.f32 %v2160_v48, %v3823_v0 }
0x1266   : > { %v2162_v51 = vadd.f32 1e-05, %v2161_v49 }
0x1268   : > { %2846 = vrsqrt.f32 %v2162_v51  ;;  %vm2169_vm15 = vweird.f32 %v2162_v51 }
0x126e   : > { %v2847_v56 = vpop.eup %2846 }
0x126f   : > { %v2164_v58 = vmul.f32 %v2847_v56, %v2162_v51  ;;  %vm2170_vm14 = vweird.f32 %v2847_v56 }
0x1270   : > { %vm2171_vm0 = vmor %vm2169_vm15, %vm2170_vm14 }
0x1271   : > { %v2165_v0 = vmul.f32 %v2847_v56, %v2164_v58 }
0x1273   : > { %v2166_v62 = vmul.f32 0.5, %v2165_v0 }
0x1275   : > { %v2167_v1 = vsub.f32 1.5, %v2166_v62 }
0x1277   : > { %v2168_v25 = vmul.f32 %v2847_v56, %v2167_v1 }
0x1279   : > { %v2172_v5 = vsel %vm2171_vm0, %v2847_v56, %v2168_v25 }
0x127a   : > { %v2173_v3 = vmul.f32 %v2172_v5, %v3903_v29 }
0x127c   : > { %v2177_v7 = vmul.f32 %v2802_v4, %v2173_v3 }
0x127e   : > { %v2181_v8 = vadd.f32 %v2803_v6, %v2177_v7 }
0x1280   : > { %2182 = vst [vmem:[%s925_s3] sm:$0xff] %v2181_v8  ;;  %2219 = vmatmul.f32.vlgmr.msrb.gmra.mxu3 %v2181_v8 }
0x1303   : > { %v2220_v13 = vpop.f32.mrf.mxu3 }
0x1304   : > { %v2221_v14 = vadd.f32 %v2804_v12, %v2220_v13 }
0x1306   : > { %v2223_v15 = vmax.f32 %v2221_v14, 0.0 }
0x1308   : > { %2260 = vmatmul.f32.vlgmr.msra.gmra.mxu0 %v2223_v15 }
0x1385   : > { %v2261_v17 = vpop.f32.mrf.mxu0 }
0x1386   : > { %v2262_v18 = vadd.f32 %v2805_v16, %v2261_v17 }
0x1388   : > { %v2264_v19 = vmul.f32 %v2262_v18, %v2262_v18 }
0x138a   : > { %2265 = vadd.xlane.f32.xlu1 %v2264_v19 }
0x13fd   : > { %v2266_v20 = vpop.xlane.xlu1 %2265 }
0x13fe   : > { %v2267_v21 = vmax.f32 %v2266_v20, 1e-24 }
0x1400   : > { %2848 = vrsqrt.f32 %v2267_v21  ;;  %vm2274_vm2 = vweird.f32 %v2267_v21 }
0x1406   : > { %v2849_v22 = vpop.eup %2848 }
0x1407   : > { %v2269_v23 = vmul.f32 %v2849_v22, %v2267_v21  ;;  %vm2275_vm1 = vweird.f32 %v2849_v22 }
0x1408   : > { %vm2276_vm3 = vmor %vm2274_vm2, %vm2275_vm1 }
0x1409   : > { %v2270_v24 = vmul.f32 %v2849_v22, %v2269_v23 }
0x140b   : > { %v2271_v26 = vmul.f32 0.5, %v2270_v24 }
0x140d   : > { %v2272_v27 = vsub.f32 1.5, %v2271_v26 }
0x140f   : > { %v2273_v28 = vmul.f32 %v2849_v22, %v2272_v27 }
0x1411   : > { %v2277_v30 = vsel %vm2276_vm3, %v2849_v22, %v2273_v28 }
0x1412   : > { %v2278_v29 = vmul.f32 %v2277_v30, %v2262_v18 }
0x1414   : > { %2279 = vst [vmem:[%s929_s28] sm:$0xff] %v2278_v29 }
0x1415 PF: > { %p40_p3 = scmp.ge.s32.totalorder %s3682_s6, 4   ;;  %s4005_s2 = smov %s3388_s25 }
0x1416   : > { %s4006_s25 = smov %s3392_s26  ;;  %s4007_s26 = smov %s3693_s1 }
0x1417   : > { %s4008_s27 = smov %s3682_s6  ;;  %42 = sbr.rel (!%p40_p3) target bundleno = 26 (0x1a), region = 224 }
0x141c   :  { %2313 = vsyncpa [#allocation3], 1 }
0x141d   :  { %2315 = vsyncpa [#allocation3 + $0x1], 1 }
0x141e   :  { %2316 = vsyncpa [#allocation5], 1 }
0x141f   :  { %2317 = vsyncpa [#allocation8], 1 }
0x1420   :  { %2318 = vsyncpa [#allocation11], 1 }
0x1421   :  { %2319 = vsyncpa [#allocation14], 1 }
0x1422   :  { %2320 = vsyncpa [#allocation17], 1 }
0x1423   :  { %2321 = vsyncpa [#allocation20], 1 }
0x1424   :  { %2322 = vsyncpa [#allocation23], 1 }
0x1425   :  { %2323 = vsyncpa [#allocation26], 1 }

</bundles_post_ra>
